<compile_context>
chip_gen: v7x
topology: tpu7x:2x2x1
jax: 0.10.0
libtpu: 0.0.40
codegen_flags: <defaults>
</compile_context>

<pallas_src>
import functools

import jax
import jax.numpy as jnp
from jax.experimental import pallas as pl
from jax.experimental.pallas import tpu as pltpu

MAX_TILE_B = 512  # molecules per grid step; keeps per-atom (H, tile_b) chunks ~16 vregs at H=32


def _force_kernel(pos_ref, w1t_ref, b1_ref, w2_ref, energy_ref, force_ref,
                  *, n_atoms, tile_b):
    """One grid step = `tile_b` molecules (all of their atoms), chunked per atom.

    pos_ref   : (3, n_atoms*tile_b)  lane l = atom (l // tile_b) of molecule (l % tile_b)
    w1t_ref   : (H, 3)   W1^T (pre-transposed in the wrapper)
    b1_ref    : (H, 1)
    w2_ref    : (H, 1)
    energy_ref: (1, tile_b)          per-molecule sum_a sum_j w2_j tanh(.)  (N*b2 added outside)
    force_ref : (3, n_atoms*tile_b)  -dE/dpos, same lane layout as pos_ref
    """
    w1t = w1t_ref[...]                                 # (H, 3)
    b1 = b1_ref[...]                                   # (H, 1)
    w2 = w2_ref[...]                                   # (H, 1)
    w1tn = -w1t                                        # fold force negation into (H,3) once

    e_sum = None
    # Static per-atom chunk loop: working set per chunk is a handful of
    # (H, tile_b) arrays instead of (H, N*tile_b) -> no vreg spills.
    for a in range(n_atoms):
        lo = a * tile_b
        p = pos_ref[:, lo:lo + tile_b]                 # (3, tile_b)

        # h[j,l] = sum_k W1[k,j] * p[k,l] + b1[j] -- K=3 unrolled VPU broadcast-FMA
        acc = (w1t[:, 0:1] * p[0:1, :]
               + w1t[:, 1:2] * p[1:2, :]
               + w1t[:, 2:3] * p[2:3, :])
        t = jnp.tanh(acc + b1)                         # (H, tile_b)  EUP

        # Energy contribution of this atom (reused product w2*t feeds the gradient too).
        w2t = w2 * t                                   # (H, tile_b), implicit (H,1) broadcast
        e_a = jnp.sum(w2t, axis=0, keepdims=True)      # (1, tile_b) sublane reduce (XLU)
        e_sum = e_a if a == 0 else e_sum + e_a

        # Analytic autograd: g = w2 * (1 - t^2) = w2 - t * (w2*t)
        g = w2 - t * w2t                               # (H, tile_b)

        # Force chunk f[k,l] = -sum_j W1[k,j] g[j,l] = sum_j w1tn[j,k] g[j,l]
        rows = [jnp.sum(w1tn[:, k:k + 1] * g, axis=0, keepdims=True)
                for k in range(3)]                     # 3 x (1, tile_b)
        force_ref[:, lo:lo + tile_b] = jnp.concatenate(rows, axis=0)  # one (3, tile_b) store

    energy_ref[...] = e_sum


def _pick_tile_b(batch):
    """Lane-dense tile (multiple of 128), capped so the grid has >= 2 steps when B allows."""
    half = -(-batch // 2)
    t = -(-half // 128) * 128
    return max(128, min(MAX_TILE_B, t))


@jax.jit
def base_force_model_forward(pos, w1, b1, w2, b2):
    """Returns (energy[B], forces[B, N, 3]) exactly like BaseForceModel.forward."""
    B, N, D = pos.shape
    assert D == 3
    H = w1.shape[1]

    tile_b = _pick_tile_b(B)
    n_tiles = -(-B // tile_b)
    B_pad = n_tiles * tile_b
    tile_m = N * tile_b                 # atoms per tile (always a multiple of 128)
    M_pad = n_tiles * tile_m

    posf = pos.astype(jnp.float32)
    if B_pad != B:                      # pad whole (fake) molecules; discarded below
        posf = jnp.pad(posf, ((0, B_pad - B), (0, 0), (0, 0)))
    # TODO(synk): in a larger pipeline, keep pos/forces persistently in this transposed
    # lane-dense layout so these wrapper-side XLA relayouts (~2x the kernel's own HBM
    # traffic) aren't paid on every call.
    pos_r = posf.reshape(n_tiles, tile_b, N, D).transpose(3, 0, 2, 1).reshape(D, M_pad)

    w1t = jnp.asarray(w1, jnp.float32).T               # (H, 3): pre-transposed
    b1c = jnp.asarray(b1, jnp.float32).reshape(H, 1)   # (H, 1)
    w2c = jnp.asarray(w2, jnp.float32).reshape(H, 1)   # (H, 1)

    kernel = functools.partial(_force_kernel, n_atoms=N, tile_b=tile_b)

    # VMEM budget (double-buffered pos + force blocks): 2 * 2 * 3*N*tile_b*4 B, i.e. a few
    # hundred KiB for typical N -- far below even v7x's 64 MiB, so no vmem_limit override.
    energy_r, force_r = pl.pallas_call(
        kernel,
        out_shape=(
            jax.ShapeDtypeStruct((1, B_pad), jnp.float32),   # energy (lane-dense)
            jax.ShapeDtypeStruct((D, M_pad), jnp.float32),   # forces (transposed)
        ),
        grid=(n_tiles,),
        in_specs=[
            pl.BlockSpec((D, tile_m), lambda i: (0, i)),     # pos (transposed, lane-dense)
            pl.BlockSpec((H, D), lambda i: (0, 0)),          # W1^T (resident)
            pl.BlockSpec((H, 1), lambda i: (0, 0)),          # b1
            pl.BlockSpec((H, 1), lambda i: (0, 0)),          # w2
        ],
        out_specs=(
            pl.BlockSpec((1, tile_b), lambda i: (0, i)),     # energy
            pl.BlockSpec((D, tile_m), lambda i: (0, i)),     # forces
        ),
        compiler_params=pltpu.CompilerParams(
            dimension_semantics=("parallel",),   # disjoint tiles -> megacore on v7x
        ),
    )(pos_r, w1t, b1c, w2c)

    b2s = jnp.asarray(b2, jnp.float32).reshape(())
    energy = energy_r[0, :B] + N * b2s                  # b2 folded in outside the kernel
    forces = (force_r.reshape(D, n_tiles, N, tile_b)
                     .transpose(1, 3, 2, 0)
                     .reshape(B_pad, N, D)[:B])
    return energy, forces


def _reference(pos, w1, b1, w2, b2):
    """Pure-JAX reference mirroring the PyTorch autograd semantics."""
    def energy_fn(p):
        h = jnp.tanh(p.reshape(-1, 3) @ w1 + b1)
        e_atom = h @ w2 + b2                       # (B*N, 1)
        return e_atom.reshape(p.shape[0], -1).sum(axis=1)
    energy = energy_fn(pos)
    forces = -jax.grad(lambda p: energy_fn(p).sum())(pos)
    return energy, forces


if __name__ == "__main__":
    D, H = 3, 32
    key = jax.random.PRNGKey(0)
    k_pos, k_w1, k_b1, k_w2, k_b2, k_pos2, k_pos3 = jax.random.split(key, 7)

    w1 = jax.random.normal(k_w1, (D, H), dtype=jnp.float32) * 0.3
    b1 = jax.random.normal(k_b1, (1, H), dtype=jnp.float32) * 0.1
    w2 = jax.random.normal(k_w2, (H, 1), dtype=jnp.float32) * 0.3
    b2 = jax.random.normal(k_b2, (1, 1), dtype=jnp.float32) * 0.1

    # Case 1: small batch (single 128-wide tile): 2 molecules x 8 atoms x 3D coords.
    B, N = 2, 8
    pos = jax.random.normal(k_pos, (B, N, D), dtype=jnp.float32)
    energy, forces = base_force_model_forward(pos, w1, b1, w2, b2)
    jax.block_until_ready((energy, forces))
    e_ref, f_ref = _reference(pos, w1, b1, w2, b2)
    assert energy.shape == (B,) and forces.shape == (B, N, D)
    assert jnp.allclose(energy, e_ref, atol=1e-4, rtol=1e-4)
    assert jnp.allclose(forces, f_ref, atol=1e-4, rtol=1e-4)

    # Case 2: two-tile path (tile_b=256, ragged last tile, odd atom count).
    B2, N2 = 260, 5
    pos2 = jax.random.normal(k_pos2, (B2, N2, D), dtype=jnp.float32)
    energy2, forces2 = base_force_model_forward(pos2, w1, b1, w2, b2)
    jax.block_until_ready((energy2, forces2))
    e2_ref, f2_ref = _reference(pos2, w1, b1, w2, b2)
    assert energy2.shape == (B2,) and forces2.shape == (B2, N2, D)
    assert jnp.allclose(energy2, e2_ref, atol=1e-4, rtol=1e-4)
    assert jnp.allclose(forces2, f2_ref, atol=1e-4, rtol=1e-4)

    # Case 3: full-width tiles (tile_b=512, 3 grid steps, ragged last tile).
    B3, N3 = 1100, 6
    pos3 = jax.random.normal(k_pos3, (B3, N3, D), dtype=jnp.float32)
    energy3, forces3 = base_force_model_forward(pos3, w1, b1, w2, b2)
    jax.block_until_ready((energy3, forces3))
    e3_ref, f3_ref = _reference(pos3, w1, b1, w2, b2)
    assert energy3.shape == (B3,) and forces3.shape == (B3, N3, D)
    assert jnp.allclose(energy3, e3_ref, atol=1e-4, rtol=1e-4)
    assert jnp.allclose(forces3, f3_ref, atol=1e-4, rtol=1e-4)

    print("KERNEL_OK")
</pallas_src>

<mosaic_0001>
module attributes {stable_mosaic.version = 11 : i64} {
  func.func @_force_kernel(%arg0: i32, %arg1: memref<3x1024xf32, #tpu.memory_space<vmem>>, %arg2: memref<32x3xf32, #tpu.memory_space<vmem>>, %arg3: memref<32x1xf32, #tpu.memory_space<vmem>>, %arg4: memref<32x1xf32, #tpu.memory_space<vmem>>, %arg5: memref<1x128xf32, #tpu.memory_space<vmem>>, %arg6: memref<3x1024xf32, #tpu.memory_space<vmem>>) attributes {dimension_semantics = [#tpu.dimension_semantics<parallel>], iteration_bounds = array<i64: 1>, scalar_prefetch = 0 : i64, scratch_operands = 0 : i64, tpu.core_type = #tpu.core_type<tc>, window_params = [{transform_indices = @transform_0, window_bounds = array<i64: 3, 1024>}, {pipeline_mode = #tpu.pipeline_mode<synchronous>, transform_indices = @transform_1, window_bounds = array<i64: 32, 3>}, {pipeline_mode = #tpu.pipeline_mode<synchronous>, transform_indices = @transform_2, window_bounds = array<i64: 32, 1>}, {pipeline_mode = #tpu.pipeline_mode<synchronous>, transform_indices = @transform_3, window_bounds = array<i64: 32, 1>}, {transform_indices = @transform_4, window_bounds = array<i64: 1, 128>}, {transform_indices = @transform_5, window_bounds = array<i64: 3, 1024>}]} {
    %c0 = arith.constant 0 : index
    %c0_0 = arith.constant 0 : index
    %0 = vector.load %arg2[%c0, %c0_0] : memref<32x3xf32, #tpu.memory_space<vmem>>, vector<32x3xf32>
    %c0_1 = arith.constant 0 : index
    %c0_2 = arith.constant 0 : index
    %1 = vector.load %arg3[%c0_1, %c0_2] : memref<32x1xf32, #tpu.memory_space<vmem>>, vector<32x1xf32>
    %c0_3 = arith.constant 0 : index
    %c0_4 = arith.constant 0 : index
    %2 = vector.load %arg4[%c0_3, %c0_4] : memref<32x1xf32, #tpu.memory_space<vmem>>, vector<32x1xf32>
    %cst = arith.constant 0.000000e+00 : f32
    %3 = vector.broadcast %cst : f32 to vector<32x3xf32>
    %4 = arith.subf %3, %0 : vector<32x3xf32>
    %c0_5 = arith.constant 0 : index
    %c0_6 = arith.constant 0 : index
    %5 = vector.load %arg1[%c0_5, %c0_6] : memref<3x1024xf32, #tpu.memory_space<vmem>>, vector<3x128xf32>
    %6 = vector.extract_strided_slice %0 {offsets = [0, 0], sizes = [32, 1], strides = [1, 1]} : vector<32x3xf32> to vector<32x1xf32>
    %7 = vector.extract_strided_slice %5 {offsets = [0, 0], sizes = [1, 128], strides = [1, 1]} : vector<3x128xf32> to vector<1x128xf32>
    %8 = vector.broadcast %6 : vector<32x1xf32> to vector<32x128xf32>
    %9 = vector.broadcast %7 : vector<1x128xf32> to vector<32x128xf32>
    %10 = arith.mulf %8, %9 : vector<32x128xf32>
    %11 = vector.extract_strided_slice %0 {offsets = [0, 1], sizes = [32, 1], strides = [1, 1]} : vector<32x3xf32> to vector<32x1xf32>
    %12 = vector.extract_strided_slice %5 {offsets = [1, 0], sizes = [1, 128], strides = [1, 1]} : vector<3x128xf32> to vector<1x128xf32>
    %13 = vector.broadcast %11 : vector<32x1xf32> to vector<32x128xf32>
    %14 = vector.broadcast %12 : vector<1x128xf32> to vector<32x128xf32>
    %15 = arith.mulf %13, %14 : vector<32x128xf32>
    %16 = arith.addf %10, %15 : vector<32x128xf32>
    %17 = vector.extract_strided_slice %0 {offsets = [0, 2], sizes = [32, 1], strides = [1, 1]} : vector<32x3xf32> to vector<32x1xf32>
    %18 = vector.extract_strided_slice %5 {offsets = [2, 0], sizes = [1, 128], strides = [1, 1]} : vector<3x128xf32> to vector<1x128xf32>
    %19 = vector.broadcast %17 : vector<32x1xf32> to vector<32x128xf32>
    %20 = vector.broadcast %18 : vector<1x128xf32> to vector<32x128xf32>
    %21 = arith.mulf %19, %20 : vector<32x128xf32>
    %22 = arith.addf %16, %21 : vector<32x128xf32>
    %23 = vector.broadcast %1 : vector<32x1xf32> to vector<32x128xf32>
    %24 = arith.addf %22, %23 : vector<32x128xf32>
    %25 = math.tanh %24 : vector<32x128xf32>
    %26 = vector.broadcast %2 : vector<32x1xf32> to vector<32x128xf32>
    %27 = arith.mulf %26, %25 : vector<32x128xf32>
    %cst_7 = arith.constant dense<0.000000e+00> : vector<128xf32>
    %28 = vector.multi_reduction <add>, %27, %cst_7 [0] : vector<32x128xf32> to vector<128xf32>
    %29 = vector.shape_cast %28 : vector<128xf32> to vector<1x128xf32>
    %30 = arith.mulf %25, %27 : vector<32x128xf32>
    %31 = vector.broadcast %2 : vector<32x1xf32> to vector<32x128xf32>
    %32 = arith.subf %31, %30 : vector<32x128xf32>
    %33 = vector.extract_strided_slice %4 {offsets = [0, 0], sizes = [32, 1], strides = [1, 1]} : vector<32x3xf32> to vector<32x1xf32>
    %34 = vector.broadcast %33 : vector<32x1xf32> to vector<32x128xf32>
    %35 = arith.mulf %34, %32 : vector<32x128xf32>
    %cst_8 = arith.constant dense<0.000000e+00> : vector<128xf32>
    %36 = vector.multi_reduction <add>, %35, %cst_8 [0] : vector<32x128xf32> to vector<128xf32>
    %37 = vector.shape_cast %36 : vector<128xf32> to vector<1x128xf32>
    %38 = vector.extract_strided_slice %4 {offsets = [0, 1], sizes = [32, 1], strides = [1, 1]} : vector<32x3xf32> to vector<32x1xf32>
    %39 = vector.broadcast %38 : vector<32x1xf32> to vector<32x128xf32>
    %40 = arith.mulf %39, %32 : vector<32x128xf32>
    %cst_9 = arith.constant dense<0.000000e+00> : vector<128xf32>
    %41 = vector.multi_reduction <add>, %40, %cst_9 [0] : vector<32x128xf32> to vector<128xf32>
    %42 = vector.shape_cast %41 : vector<128xf32> to vector<1x128xf32>
    %43 = vector.extract_strided_slice %4 {offsets = [0, 2], sizes = [32, 1], strides = [1, 1]} : vector<32x3xf32> to vector<32x1xf32>
    %44 = vector.broadcast %43 : vector<32x1xf32> to vector<32x128xf32>
    %45 = arith.mulf %44, %32 : vector<32x128xf32>
    %cst_10 = arith.constant dense<0.000000e+00> : vector<128xf32>
    %46 = vector.multi_reduction <add>, %45, %cst_10 [0] : vector<32x128xf32> to vector<128xf32>
    %47 = vector.shape_cast %46 : vector<128xf32> to vector<1x128xf32>
    %48 = tpu.concatenate %37, %42, %47 in 0 : vector<1x128xf32>, vector<1x128xf32>, vector<1x128xf32> -> vector<3x128xf32>
    %c0_11 = arith.constant 0 : index
    %c0_12 = arith.constant 0 : index
    %49 = vector.load %arg6[%c0_11, %c0_12] : memref<3x1024xf32, #tpu.memory_space<vmem>>, vector<3x128xf32>
    tpu.vector_store %arg6[%c0_11, %c0_12], %48 {strides = array<i32>} : memref<3x1024xf32, #tpu.memory_space<vmem>>, vector<3x128xf32>,
    %c0_13 = arith.constant 0 : index
    %c128 = arith.constant 128 : index
    %50 = vector.load %arg1[%c0_13, %c128] : memref<3x1024xf32, #tpu.memory_space<vmem>>, vector<3x128xf32>
    %51 = vector.extract_strided_slice %0 {offsets = [0, 0], sizes = [32, 1], strides = [1, 1]} : vector<32x3xf32> to vector<32x1xf32>
    %52 = vector.extract_strided_slice %50 {offsets = [0, 0], sizes = [1, 128], strides = [1, 1]} : vector<3x128xf32> to vector<1x128xf32>
    %53 = vector.broadcast %51 : vector<32x1xf32> to vector<32x128xf32>
    %54 = vector.broadcast %52 : vector<1x128xf32> to vector<32x128xf32>
    %55 = arith.mulf %53, %54 : vector<32x128xf32>
    %56 = vector.extract_strided_slice %0 {offsets = [0, 1], sizes = [32, 1], strides = [1, 1]} : vector<32x3xf32> to vector<32x1xf32>
    %57 = vector.extract_strided_slice %50 {offsets = [1, 0], sizes = [1, 128], strides = [1, 1]} : vector<3x128xf32> to vector<1x128xf32>
    %58 = vector.broadcast %56 : vector<32x1xf32> to vector<32x128xf32>
    %59 = vector.broadcast %57 : vector<1x128xf32> to vector<32x128xf32>
    %60 = arith.mulf %58, %59 : vector<32x128xf32>
    %61 = arith.addf %55, %60 : vector<32x128xf32>
    %62 = vector.extract_strided_slice %0 {offsets = [0, 2], sizes = [32, 1], strides = [1, 1]} : vector<32x3xf32> to vector<32x1xf32>
    %63 = vector.extract_strided_slice %50 {offsets = [2, 0], sizes = [1, 128], strides = [1, 1]} : vector<3x128xf32> to vector<1x128xf32>
    %64 = vector.broadcast %62 : vector<32x1xf32> to vector<32x128xf32>
    %65 = vector.broadcast %63 : vector<1x128xf32> to vector<32x128xf32>
    %66 = arith.mulf %64, %65 : vector<32x128xf32>
    %67 = arith.addf %61, %66 : vector<32x128xf32>
    %68 = vector.broadcast %1 : vector<32x1xf32> to vector<32x128xf32>
    %69 = arith.addf %67, %68 : vector<32x128xf32>
    %70 = math.tanh %69 : vector<32x128xf32>
    %71 = vector.broadcast %2 : vector<32x1xf32> to vector<32x128xf32>
    %72 = arith.mulf %71, %70 : vector<32x128xf32>
    %cst_14 = arith.constant dense<0.000000e+00> : vector<128xf32>
    %73 = vector.multi_reduction <add>, %72, %cst_14 [0] : vector<32x128xf32> to vector<128xf32>
    %74 = vector.shape_cast %73 : vector<128xf32> to vector<1x128xf32>
    %75 = arith.addf %29, %74 : vector<1x128xf32>
    %76 = arith.mulf %70, %72 : vector<32x128xf32>
    %77 = vector.broadcast %2 : vector<32x1xf32> to vector<32x128xf32>
    %78 = arith.subf %77, %76 : vector<32x128xf32>
    %79 = vector.extract_strided_slice %4 {offsets = [0, 0], sizes = [32, 1], strides = [1, 1]} : vector<32x3xf32> to vector<32x1xf32>
    %80 = vector.broadcast %79 : vector<32x1xf32> to vector<32x128xf32>
    %81 = arith.mulf %80, %78 : vector<32x128xf32>
    %cst_15 = arith.constant dense<0.000000e+00> : vector<128xf32>
    %82 = vector.multi_reduction <add>, %81, %cst_15 [0] : vector<32x128xf32> to vector<128xf32>
    %83 = vector.shape_cast %82 : vector<128xf32> to vector<1x128xf32>
    %84 = vector.extract_strided_slice %4 {offsets = [0, 1], sizes = [32, 1], strides = [1, 1]} : vector<32x3xf32> to vector<32x1xf32>
    %85 = vector.broadcast %84 : vector<32x1xf32> to vector<32x128xf32>
    %86 = arith.mulf %85, %78 : vector<32x128xf32>
    %cst_16 = arith.constant dense<0.000000e+00> : vector<128xf32>
    %87 = vector.multi_reduction <add>, %86, %cst_16 [0] : vector<32x128xf32> to vector<128xf32>
    %88 = vector.shape_cast %87 : vector<128xf32> to vector<1x128xf32>
    %89 = vector.extract_strided_slice %4 {offsets = [0, 2], sizes = [32, 1], strides = [1, 1]} : vector<32x3xf32> to vector<32x1xf32>
    %90 = vector.broadcast %89 : vector<32x1xf32> to vector<32x128xf32>
    %91 = arith.mulf %90, %78 : vector<32x128xf32>
    %cst_17 = arith.constant dense<0.000000e+00> : vector<128xf32>
    %92 = vector.multi_reduction <add>, %91, %cst_17 [0] : vector<32x128xf32> to vector<128xf32>
    %93 = vector.shape_cast %92 : vector<128xf32> to vector<1x128xf32>
    %94 = tpu.concatenate %83, %88, %93 in 0 : vector<1x128xf32>, vector<1x128xf32>, vector<1x128xf32> -> vector<3x128xf32>
    %c0_18 = arith.constant 0 : index
    %c128_19 = arith.constant 128 : index
    %95 = vector.load %arg6[%c0_18, %c128_19] : memref<3x1024xf32, #tpu.memory_space<vmem>>, vector<3x128xf32>
    tpu.vector_store %arg6[%c0_18, %c128_19], %94 {strides = array<i32>} : memref<3x1024xf32, #tpu.memory_space<vmem>>, vector<3x128xf32>,
    %c0_20 = arith.constant 0 : index
    %c256 = arith.constant 256 : index
    %96 = vector.load %arg1[%c0_20, %c256] : memref<3x1024xf32, #tpu.memory_space<vmem>>, vector<3x128xf32>
    %97 = vector.extract_strided_slice %0 {offsets = [0, 0], sizes = [32, 1], strides = [1, 1]} : vector<32x3xf32> to vector<32x1xf32>
    %98 = vector.extract_strided_slice %96 {offsets = [0, 0], sizes = [1, 128], strides = [1, 1]} : vector<3x128xf32> to vector<1x128xf32>
    %99 = vector.broadcast %97 : vector<32x1xf32> to vector<32x128xf32>
    %100 = vector.broadcast %98 : vector<1x128xf32> to vector<32x128xf32>
    %101 = arith.mulf %99, %100 : vector<32x128xf32>
    %102 = vector.extract_strided_slice %0 {offsets = [0, 1], sizes = [32, 1], strides = [1, 1]} : vector<32x3xf32> to vector<32x1xf32>
    %103 = vector.extract_strided_slice %96 {offsets = [1, 0], sizes = [1, 128], strides = [1, 1]} : vector<3x128xf32> to vector<1x128xf32>
    %104 = vector.broadcast %102 : vector<32x1xf32> to vector<32x128xf32>
    %105 = vector.broadcast %103 : vector<1x128xf32> to vector<32x128xf32>
    %106 = arith.mulf %104, %105 : vector<32x128xf32>
    %107 = arith.addf %101, %106 : vector<32x128xf32>
    %108 = vector.extract_strided_slice %0 {offsets = [0, 2], sizes = [32, 1], strides = [1, 1]} : vector<32x3xf32> to vector<32x1xf32>
    %109 = vector.extract_strided_slice %96 {offsets = [2, 0], sizes = [1, 128], strides = [1, 1]} : vector<3x128xf32> to vector<1x128xf32>
    %110 = vector.broadcast %108 : vector<32x1xf32> to vector<32x128xf32>
    %111 = vector.broadcast %109 : vector<1x128xf32> to vector<32x128xf32>
    %112 = arith.mulf %110, %111 : vector<32x128xf32>
    %113 = arith.addf %107, %112 : vector<32x128xf32>
    %114 = vector.broadcast %1 : vector<32x1xf32> to vector<32x128xf32>
    %115 = arith.addf %113, %114 : vector<32x128xf32>
    %116 = math.tanh %115 : vector<32x128xf32>
    %117 = vector.broadcast %2 : vector<32x1xf32> to vector<32x128xf32>
    %118 = arith.mulf %117, %116 : vector<32x128xf32>
    %cst_21 = arith.constant dense<0.000000e+00> : vector<128xf32>
    %119 = vector.multi_reduction <add>, %118, %cst_21 [0] : vector<32x128xf32> to vector<128xf32>
    %120 = vector.shape_cast %119 : vector<128xf32> to vector<1x128xf32>
    %121 = arith.addf %75, %120 : vector<1x128xf32>
    %122 = arith.mulf %116, %118 : vector<32x128xf32>
    %123 = vector.broadcast %2 : vector<32x1xf32> to vector<32x128xf32>
    %124 = arith.subf %123, %122 : vector<32x128xf32>
    %125 = vector.extract_strided_slice %4 {offsets = [0, 0], sizes = [32, 1], strides = [1, 1]} : vector<32x3xf32> to vector<32x1xf32>
    %126 = vector.broadcast %125 : vector<32x1xf32> to vector<32x128xf32>
    %127 = arith.mulf %126, %124 : vector<32x128xf32>
    %cst_22 = arith.constant dense<0.000000e+00> : vector<128xf32>
    %128 = vector.multi_reduction <add>, %127, %cst_22 [0] : vector<32x128xf32> to vector<128xf32>
    %129 = vector.shape_cast %128 : vector<128xf32> to vector<1x128xf32>
    %130 = vector.extract_strided_slice %4 {offsets = [0, 1], sizes = [32, 1], strides = [1, 1]} : vector<32x3xf32> to vector<32x1xf32>
    %131 = vector.broadcast %130 : vector<32x1xf32> to vector<32x128xf32>
    %132 = arith.mulf %131, %124 : vector<32x128xf32>
    %cst_23 = arith.constant dense<0.000000e+00> : vector<128xf32>
    %133 = vector.multi_reduction <add>, %132, %cst_23 [0] : vector<32x128xf32> to vector<128xf32>
    %134 = vector.shape_cast %133 : vector<128xf32> to vector<1x128xf32>
    %135 = vector.extract_strided_slice %4 {offsets = [0, 2], sizes = [32, 1], strides = [1, 1]} : vector<32x3xf32> to vector<32x1xf32>
    %136 = vector.broadcast %135 : vector<32x1xf32> to vector<32x128xf32>
    %137 = arith.mulf %136, %124 : vector<32x128xf32>
    %cst_24 = arith.constant dense<0.000000e+00> : vector<128xf32>
    %138 = vector.multi_reduction <add>, %137, %cst_24 [0] : vector<32x128xf32> to vector<128xf32>
    %139 = vector.shape_cast %138 : vector<128xf32> to vector<1x128xf32>
    %140 = tpu.concatenate %129, %134, %139 in 0 : vector<1x128xf32>, vector<1x128xf32>, vector<1x128xf32> -> vector<3x128xf32>
    %c0_25 = arith.constant 0 : index
    %c256_26 = arith.constant 256 : index
    %141 = vector.load %arg6[%c0_25, %c256_26] : memref<3x1024xf32, #tpu.memory_space<vmem>>, vector<3x128xf32>
    tpu.vector_store %arg6[%c0_25, %c256_26], %140 {strides = array<i32>} : memref<3x1024xf32, #tpu.memory_space<vmem>>, vector<3x128xf32>,
    %c0_27 = arith.constant 0 : index
    %c384 = arith.constant 384 : index
    %142 = vector.load %arg1[%c0_27, %c384] : memref<3x1024xf32, #tpu.memory_space<vmem>>, vector<3x128xf32>
    %143 = vector.extract_strided_slice %0 {offsets = [0, 0], sizes = [32, 1], strides = [1, 1]} : vector<32x3xf32> to vector<32x1xf32>
    %144 = vector.extract_strided_slice %142 {offsets = [0, 0], sizes = [1, 128], strides = [1, 1]} : vector<3x128xf32> to vector<1x128xf32>
    %145 = vector.broadcast %143 : vector<32x1xf32> to vector<32x128xf32>
    %146 = vector.broadcast %144 : vector<1x128xf32> to vector<32x128xf32>
    %147 = arith.mulf %145, %146 : vector<32x128xf32>
    %148 = vector.extract_strided_slice %0 {offsets = [0, 1], sizes = [32, 1], strides = [1, 1]} : vector<32x3xf32> to vector<32x1xf32>
    %149 = vector.extract_strided_slice %142 {offsets = [1, 0], sizes = [1, 128], strides = [1, 1]} : vector<3x128xf32> to vector<1x128xf32>
    %150 = vector.broadcast %148 : vector<32x1xf32> to vector<32x128xf32>
    %151 = vector.broadcast %149 : vector<1x128xf32> to vector<32x128xf32>
    %152 = arith.mulf %150, %151 : vector<32x128xf32>
    %153 = arith.addf %147, %152 : vector<32x128xf32>
    %154 = vector.extract_strided_slice %0 {offsets = [0, 2], sizes = [32, 1], strides = [1, 1]} : vector<32x3xf32> to vector<32x1xf32>
    %155 = vector.extract_strided_slice %142 {offsets = [2, 0], sizes = [1, 128], strides = [1, 1]} : vector<3x128xf32> to vector<1x128xf32>
    %156 = vector.broadcast %154 : vector<32x1xf32> to vector<32x128xf32>
    %157 = vector.broadcast %155 : vector<1x128xf32> to vector<32x128xf32>
    %158 = arith.mulf %156, %157 : vector<32x128xf32>
    %159 = arith.addf %153, %158 : vector<32x128xf32>
    %160 = vector.broadcast %1 : vector<32x1xf32> to vector<32x128xf32>
    %161 = arith.addf %159, %160 : vector<32x128xf32>
    %162 = math.tanh %161 : vector<32x128xf32>
    %163 = vector.broadcast %2 : vector<32x1xf32> to vector<32x128xf32>
    %164 = arith.mulf %163, %162 : vector<32x128xf32>
    %cst_28 = arith.constant dense<0.000000e+00> : vector<128xf32>
    %165 = vector.multi_reduction <add>, %164, %cst_28 [0] : vector<32x128xf32> to vector<128xf32>
    %166 = vector.shape_cast %165 : vector<128xf32> to vector<1x128xf32>
    %167 = arith.addf %121, %166 : vector<1x128xf32>
    %168 = arith.mulf %162, %164 : vector<32x128xf32>
    %169 = vector.broadcast %2 : vector<32x1xf32> to vector<32x128xf32>
    %170 = arith.subf %169, %168 : vector<32x128xf32>
    %171 = vector.extract_strided_slice %4 {offsets = [0, 0], sizes = [32, 1], strides = [1, 1]} : vector<32x3xf32> to vector<32x1xf32>
    %172 = vector.broadcast %171 : vector<32x1xf32> to vector<32x128xf32>
    %173 = arith.mulf %172, %170 : vector<32x128xf32>
    %cst_29 = arith.constant dense<0.000000e+00> : vector<128xf32>
    %174 = vector.multi_reduction <add>, %173, %cst_29 [0] : vector<32x128xf32> to vector<128xf32>
    %175 = vector.shape_cast %174 : vector<128xf32> to vector<1x128xf32>
    %176 = vector.extract_strided_slice %4 {offsets = [0, 1], sizes = [32, 1], strides = [1, 1]} : vector<32x3xf32> to vector<32x1xf32>
    %177 = vector.broadcast %176 : vector<32x1xf32> to vector<32x128xf32>
    %178 = arith.mulf %177, %170 : vector<32x128xf32>
    %cst_30 = arith.constant dense<0.000000e+00> : vector<128xf32>
    %179 = vector.multi_reduction <add>, %178, %cst_30 [0] : vector<32x128xf32> to vector<128xf32>
    %180 = vector.shape_cast %179 : vector<128xf32> to vector<1x128xf32>
    %181 = vector.extract_strided_slice %4 {offsets = [0, 2], sizes = [32, 1], strides = [1, 1]} : vector<32x3xf32> to vector<32x1xf32>
    %182 = vector.broadcast %181 : vector<32x1xf32> to vector<32x128xf32>
    %183 = arith.mulf %182, %170 : vector<32x128xf32>
    %cst_31 = arith.constant dense<0.000000e+00> : vector<128xf32>
    %184 = vector.multi_reduction <add>, %183, %cst_31 [0] : vector<32x128xf32> to vector<128xf32>
    %185 = vector.shape_cast %184 : vector<128xf32> to vector<1x128xf32>
    %186 = tpu.concatenate %175, %180, %185 in 0 : vector<1x128xf32>, vector<1x128xf32>, vector<1x128xf32> -> vector<3x128xf32>
    %c0_32 = arith.constant 0 : index
    %c384_33 = arith.constant 384 : index
    %187 = vector.load %arg6[%c0_32, %c384_33] : memref<3x1024xf32, #tpu.memory_space<vmem>>, vector<3x128xf32>
    tpu.vector_store %arg6[%c0_32, %c384_33], %186 {strides = array<i32>} : memref<3x1024xf32, #tpu.memory_space<vmem>>, vector<3x128xf32>,
    %c0_34 = arith.constant 0 : index
    %c512 = arith.constant 512 : index
    %188 = vector.load %arg1[%c0_34, %c512] : memref<3x1024xf32, #tpu.memory_space<vmem>>, vector<3x128xf32>
    %189 = vector.extract_strided_slice %0 {offsets = [0, 0], sizes = [32, 1], strides = [1, 1]} : vector<32x3xf32> to vector<32x1xf32>
    %190 = vector.extract_strided_slice %188 {offsets = [0, 0], sizes = [1, 128], strides = [1, 1]} : vector<3x128xf32> to vector<1x128xf32>
    %191 = vector.broadcast %189 : vector<32x1xf32> to vector<32x128xf32>
    %192 = vector.broadcast %190 : vector<1x128xf32> to vector<32x128xf32>
    %193 = arith.mulf %191, %192 : vector<32x128xf32>
    %194 = vector.extract_strided_slice %0 {offsets = [0, 1], sizes = [32, 1], strides = [1, 1]} : vector<32x3xf32> to vector<32x1xf32>
    %195 = vector.extract_strided_slice %188 {offsets = [1, 0], sizes = [1, 128], strides = [1, 1]} : vector<3x128xf32> to vector<1x128xf32>
    %196 = vector.broadcast %194 : vector<32x1xf32> to vector<32x128xf32>
    %197 = vector.broadcast %195 : vector<1x128xf32> to vector<32x128xf32>
    %198 = arith.mulf %196, %197 : vector<32x128xf32>
    %199 = arith.addf %193, %198 : vector<32x128xf32>
    %200 = vector.extract_strided_slice %0 {offsets = [0, 2], sizes = [32, 1], strides = [1, 1]} : vector<32x3xf32> to vector<32x1xf32>
    %201 = vector.extract_strided_slice %188 {offsets = [2, 0], sizes = [1, 128], strides = [1, 1]} : vector<3x128xf32> to vector<1x128xf32>
    %202 = vector.broadcast %200 : vector<32x1xf32> to vector<32x128xf32>
    %203 = vector.broadcast %201 : vector<1x128xf32> to vector<32x128xf32>
    %204 = arith.mulf %202, %203 : vector<32x128xf32>
    %205 = arith.addf %199, %204 : vector<32x128xf32>
    %206 = vector.broadcast %1 : vector<32x1xf32> to vector<32x128xf32>
    %207 = arith.addf %205, %206 : vector<32x128xf32>
    %208 = math.tanh %207 : vector<32x128xf32>
    %209 = vector.broadcast %2 : vector<32x1xf32> to vector<32x128xf32>
    %210 = arith.mulf %209, %208 : vector<32x128xf32>
    %cst_35 = arith.constant dense<0.000000e+00> : vector<128xf32>
    %211 = vector.multi_reduction <add>, %210, %cst_35 [0] : vector<32x128xf32> to vector<128xf32>
    %212 = vector.shape_cast %211 : vector<128xf32> to vector<1x128xf32>
    %213 = arith.addf %167, %212 : vector<1x128xf32>
    %214 = arith.mulf %208, %210 : vector<32x128xf32>
    %215 = vector.broadcast %2 : vector<32x1xf32> to vector<32x128xf32>
    %216 = arith.subf %215, %214 : vector<32x128xf32>
    %217 = vector.extract_strided_slice %4 {offsets = [0, 0], sizes = [32, 1], strides = [1, 1]} : vector<32x3xf32> to vector<32x1xf32>
    %218 = vector.broadcast %217 : vector<32x1xf32> to vector<32x128xf32>
    %219 = arith.mulf %218, %216 : vector<32x128xf32>
    %cst_36 = arith.constant dense<0.000000e+00> : vector<128xf32>
    %220 = vector.multi_reduction <add>, %219, %cst_36 [0] : vector<32x128xf32> to vector<128xf32>
    %221 = vector.shape_cast %220 : vector<128xf32> to vector<1x128xf32>
    %222 = vector.extract_strided_slice %4 {offsets = [0, 1], sizes = [32, 1], strides = [1, 1]} : vector<32x3xf32> to vector<32x1xf32>
    %223 = vector.broadcast %222 : vector<32x1xf32> to vector<32x128xf32>
    %224 = arith.mulf %223, %216 : vector<32x128xf32>
    %cst_37 = arith.constant dense<0.000000e+00> : vector<128xf32>
    %225 = vector.multi_reduction <add>, %224, %cst_37 [0] : vector<32x128xf32> to vector<128xf32>
    %226 = vector.shape_cast %225 : vector<128xf32> to vector<1x128xf32>
    %227 = vector.extract_strided_slice %4 {offsets = [0, 2], sizes = [32, 1], strides = [1, 1]} : vector<32x3xf32> to vector<32x1xf32>
    %228 = vector.broadcast %227 : vector<32x1xf32> to vector<32x128xf32>
    %229 = arith.mulf %228, %216 : vector<32x128xf32>
    %cst_38 = arith.constant dense<0.000000e+00> : vector<128xf32>
    %230 = vector.multi_reduction <add>, %229, %cst_38 [0] : vector<32x128xf32> to vector<128xf32>
    %231 = vector.shape_cast %230 : vector<128xf32> to vector<1x128xf32>
    %232 = tpu.concatenate %221, %226, %231 in 0 : vector<1x128xf32>, vector<1x128xf32>, vector<1x128xf32> -> vector<3x128xf32>
    %c0_39 = arith.constant 0 : index
    %c512_40 = arith.constant 512 : index
    %233 = vector.load %arg6[%c0_39, %c512_40] : memref<3x1024xf32, #tpu.memory_space<vmem>>, vector<3x128xf32>
    tpu.vector_store %arg6[%c0_39, %c512_40], %232 {strides = array<i32>} : memref<3x1024xf32, #tpu.memory_space<vmem>>, vector<3x128xf32>,
    %c0_41 = arith.constant 0 : index
    %c640 = arith.constant 640 : index
    %234 = vector.load %arg1[%c0_41, %c640] : memref<3x1024xf32, #tpu.memory_space<vmem>>, vector<3x128xf32>
    %235 = vector.extract_strided_slice %0 {offsets = [0, 0], sizes = [32, 1], strides = [1, 1]} : vector<32x3xf32> to vector<32x1xf32>
    %236 = vector.extract_strided_slice %234 {offsets = [0, 0], sizes = [1, 128], strides = [1, 1]} : vector<3x128xf32> to vector<1x128xf32>
    %237 = vector.broadcast %235 : vector<32x1xf32> to vector<32x128xf32>
    %238 = vector.broadcast %236 : vector<1x128xf32> to vector<32x128xf32>
    %239 = arith.mulf %237, %238 : vector<32x128xf32>
    %240 = vector.extract_strided_slice %0 {offsets = [0, 1], sizes = [32, 1], strides = [1, 1]} : vector<32x3xf32> to vector<32x1xf32>
    %241 = vector.extract_strided_slice %234 {offsets = [1, 0], sizes = [1, 128], strides = [1, 1]} : vector<3x128xf32> to vector<1x128xf32>
    %242 = vector.broadcast %240 : vector<32x1xf32> to vector<32x128xf32>
    %243 = vector.broadcast %241 : vector<1x128xf32> to vector<32x128xf32>
    %244 = arith.mulf %242, %243 : vector<32x128xf32>
    %245 = arith.addf %239, %244 : vector<32x128xf32>
    %246 = vector.extract_strided_slice %0 {offsets = [0, 2], sizes = [32, 1], strides = [1, 1]} : vector<32x3xf32> to vector<32x1xf32>
    %247 = vector.extract_strided_slice %234 {offsets = [2, 0], sizes = [1, 128], strides = [1, 1]} : vector<3x128xf32> to vector<1x128xf32>
    %248 = vector.broadcast %246 : vector<32x1xf32> to vector<32x128xf32>
    %249 = vector.broadcast %247 : vector<1x128xf32> to vector<32x128xf32>
    %250 = arith.mulf %248, %249 : vector<32x128xf32>
    %251 = arith.addf %245, %250 : vector<32x128xf32>
    %252 = vector.broadcast %1 : vector<32x1xf32> to vector<32x128xf32>
    %253 = arith.addf %251, %252 : vector<32x128xf32>
    %254 = math.tanh %253 : vector<32x128xf32>
    %255 = vector.broadcast %2 : vector<32x1xf32> to vector<32x128xf32>
    %256 = arith.mulf %255, %254 : vector<32x128xf32>
    %cst_42 = arith.constant dense<0.000000e+00> : vector<128xf32>
    %257 = vector.multi_reduction <add>, %256, %cst_42 [0] : vector<32x128xf32> to vector<128xf32>
    %258 = vector.shape_cast %257 : vector<128xf32> to vector<1x128xf32>
    %259 = arith.addf %213, %258 : vector<1x128xf32>
    %260 = arith.mulf %254, %256 : vector<32x128xf32>
    %261 = vector.broadcast %2 : vector<32x1xf32> to vector<32x128xf32>
    %262 = arith.subf %261, %260 : vector<32x128xf32>
    %263 = vector.extract_strided_slice %4 {offsets = [0, 0], sizes = [32, 1], strides = [1, 1]} : vector<32x3xf32> to vector<32x1xf32>
    %264 = vector.broadcast %263 : vector<32x1xf32> to vector<32x128xf32>
    %265 = arith.mulf %264, %262 : vector<32x128xf32>
    %cst_43 = arith.constant dense<0.000000e+00> : vector<128xf32>
    %266 = vector.multi_reduction <add>, %265, %cst_43 [0] : vector<32x128xf32> to vector<128xf32>
    %267 = vector.shape_cast %266 : vector<128xf32> to vector<1x128xf32>
    %268 = vector.extract_strided_slice %4 {offsets = [0, 1], sizes = [32, 1], strides = [1, 1]} : vector<32x3xf32> to vector<32x1xf32>
    %269 = vector.broadcast %268 : vector<32x1xf32> to vector<32x128xf32>
    %270 = arith.mulf %269, %262 : vector<32x128xf32>
    %cst_44 = arith.constant dense<0.000000e+00> : vector<128xf32>
    %271 = vector.multi_reduction <add>, %270, %cst_44 [0] : vector<32x128xf32> to vector<128xf32>
    %272 = vector.shape_cast %271 : vector<128xf32> to vector<1x128xf32>
    %273 = vector.extract_strided_slice %4 {offsets = [0, 2], sizes = [32, 1], strides = [1, 1]} : vector<32x3xf32> to vector<32x1xf32>
    %274 = vector.broadcast %273 : vector<32x1xf32> to vector<32x128xf32>
    %275 = arith.mulf %274, %262 : vector<32x128xf32>
    %cst_45 = arith.constant dense<0.000000e+00> : vector<128xf32>
    %276 = vector.multi_reduction <add>, %275, %cst_45 [0] : vector<32x128xf32> to vector<128xf32>
    %277 = vector.shape_cast %276 : vector<128xf32> to vector<1x128xf32>
    %278 = tpu.concatenate %267, %272, %277 in 0 : vector<1x128xf32>, vector<1x128xf32>, vector<1x128xf32> -> vector<3x128xf32>
    %c0_46 = arith.constant 0 : index
    %c640_47 = arith.constant 640 : index
    %279 = vector.load %arg6[%c0_46, %c640_47] : memref<3x1024xf32, #tpu.memory_space<vmem>>, vector<3x128xf32>
    tpu.vector_store %arg6[%c0_46, %c640_47], %278 {strides = array<i32>} : memref<3x1024xf32, #tpu.memory_space<vmem>>, vector<3x128xf32>,
    %c0_48 = arith.constant 0 : index
    %c768 = arith.constant 768 : index
    %280 = vector.load %arg1[%c0_48, %c768] : memref<3x1024xf32, #tpu.memory_space<vmem>>, vector<3x128xf32>
    %281 = vector.extract_strided_slice %0 {offsets = [0, 0], sizes = [32, 1], strides = [1, 1]} : vector<32x3xf32> to vector<32x1xf32>
    %282 = vector.extract_strided_slice %280 {offsets = [0, 0], sizes = [1, 128], strides = [1, 1]} : vector<3x128xf32> to vector<1x128xf32>
    %283 = vector.broadcast %281 : vector<32x1xf32> to vector<32x128xf32>
    %284 = vector.broadcast %282 : vector<1x128xf32> to vector<32x128xf32>
    %285 = arith.mulf %283, %284 : vector<32x128xf32>
    %286 = vector.extract_strided_slice %0 {offsets = [0, 1], sizes = [32, 1], strides = [1, 1]} : vector<32x3xf32> to vector<32x1xf32>
    %287 = vector.extract_strided_slice %280 {offsets = [1, 0], sizes = [1, 128], strides = [1, 1]} : vector<3x128xf32> to vector<1x128xf32>
    %288 = vector.broadcast %286 : vector<32x1xf32> to vector<32x128xf32>
    %289 = vector.broadcast %287 : vector<1x128xf32> to vector<32x128xf32>
    %290 = arith.mulf %288, %289 : vector<32x128xf32>
    %291 = arith.addf %285, %290 : vector<32x128xf32>
    %292 = vector.extract_strided_slice %0 {offsets = [0, 2], sizes = [32, 1], strides = [1, 1]} : vector<32x3xf32> to vector<32x1xf32>
    %293 = vector.extract_strided_slice %280 {offsets = [2, 0], sizes = [1, 128], strides = [1, 1]} : vector<3x128xf32> to vector<1x128xf32>
    %294 = vector.broadcast %292 : vector<32x1xf32> to vector<32x128xf32>
    %295 = vector.broadcast %293 : vector<1x128xf32> to vector<32x128xf32>
    %296 = arith.mulf %294, %295 : vector<32x128xf32>
    %297 = arith.addf %291, %296 : vector<32x128xf32>
    %298 = vector.broadcast %1 : vector<32x1xf32> to vector<32x128xf32>
    %299 = arith.addf %297, %298 : vector<32x128xf32>
    %300 = math.tanh %299 : vector<32x128xf32>
    %301 = vector.broadcast %2 : vector<32x1xf32> to vector<32x128xf32>
    %302 = arith.mulf %301, %300 : vector<32x128xf32>
    %cst_49 = arith.constant dense<0.000000e+00> : vector<128xf32>
    %303 = vector.multi_reduction <add>, %302, %cst_49 [0] : vector<32x128xf32> to vector<128xf32>
    %304 = vector.shape_cast %303 : vector<128xf32> to vector<1x128xf32>
    %305 = arith.addf %259, %304 : vector<1x128xf32>
    %306 = arith.mulf %300, %302 : vector<32x128xf32>
    %307 = vector.broadcast %2 : vector<32x1xf32> to vector<32x128xf32>
    %308 = arith.subf %307, %306 : vector<32x128xf32>
    %309 = vector.extract_strided_slice %4 {offsets = [0, 0], sizes = [32, 1], strides = [1, 1]} : vector<32x3xf32> to vector<32x1xf32>
    %310 = vector.broadcast %309 : vector<32x1xf32> to vector<32x128xf32>
    %311 = arith.mulf %310, %308 : vector<32x128xf32>
    %cst_50 = arith.constant dense<0.000000e+00> : vector<128xf32>
    %312 = vector.multi_reduction <add>, %311, %cst_50 [0] : vector<32x128xf32> to vector<128xf32>
    %313 = vector.shape_cast %312 : vector<128xf32> to vector<1x128xf32>
    %314 = vector.extract_strided_slice %4 {offsets = [0, 1], sizes = [32, 1], strides = [1, 1]} : vector<32x3xf32> to vector<32x1xf32>
    %315 = vector.broadcast %314 : vector<32x1xf32> to vector<32x128xf32>
    %316 = arith.mulf %315, %308 : vector<32x128xf32>
    %cst_51 = arith.constant dense<0.000000e+00> : vector<128xf32>
    %317 = vector.multi_reduction <add>, %316, %cst_51 [0] : vector<32x128xf32> to vector<128xf32>
    %318 = vector.shape_cast %317 : vector<128xf32> to vector<1x128xf32>
    %319 = vector.extract_strided_slice %4 {offsets = [0, 2], sizes = [32, 1], strides = [1, 1]} : vector<32x3xf32> to vector<32x1xf32>
    %320 = vector.broadcast %319 : vector<32x1xf32> to vector<32x128xf32>
    %321 = arith.mulf %320, %308 : vector<32x128xf32>
    %cst_52 = arith.constant dense<0.000000e+00> : vector<128xf32>
    %322 = vector.multi_reduction <add>, %321, %cst_52 [0] : vector<32x128xf32> to vector<128xf32>
    %323 = vector.shape_cast %322 : vector<128xf32> to vector<1x128xf32>
    %324 = tpu.concatenate %313, %318, %323 in 0 : vector<1x128xf32>, vector<1x128xf32>, vector<1x128xf32> -> vector<3x128xf32>
    %c0_53 = arith.constant 0 : index
    %c768_54 = arith.constant 768 : index
    %325 = vector.load %arg6[%c0_53, %c768_54] : memref<3x1024xf32, #tpu.memory_space<vmem>>, vector<3x128xf32>
    tpu.vector_store %arg6[%c0_53, %c768_54], %324 {strides = array<i32>} : memref<3x1024xf32, #tpu.memory_space<vmem>>, vector<3x128xf32>,
    %c0_55 = arith.constant 0 : index
    %c896 = arith.constant 896 : index
    %326 = vector.load %arg1[%c0_55, %c896] : memref<3x1024xf32, #tpu.memory_space<vmem>>, vector<3x128xf32>
    %327 = vector.extract_strided_slice %0 {offsets = [0, 0], sizes = [32, 1], strides = [1, 1]} : vector<32x3xf32> to vector<32x1xf32>
    %328 = vector.extract_strided_slice %326 {offsets = [0, 0], sizes = [1, 128], strides = [1, 1]} : vector<3x128xf32> to vector<1x128xf32>
    %329 = vector.broadcast %327 : vector<32x1xf32> to vector<32x128xf32>
    %330 = vector.broadcast %328 : vector<1x128xf32> to vector<32x128xf32>
    %331 = arith.mulf %329, %330 : vector<32x128xf32>
    %332 = vector.extract_strided_slice %0 {offsets = [0, 1], sizes = [32, 1], strides = [1, 1]} : vector<32x3xf32> to vector<32x1xf32>
    %333 = vector.extract_strided_slice %326 {offsets = [1, 0], sizes = [1, 128], strides = [1, 1]} : vector<3x128xf32> to vector<1x128xf32>
    %334 = vector.broadcast %332 : vector<32x1xf32> to vector<32x128xf32>
    %335 = vector.broadcast %333 : vector<1x128xf32> to vector<32x128xf32>
    %336 = arith.mulf %334, %335 : vector<32x128xf32>
    %337 = arith.addf %331, %336 : vector<32x128xf32>
    %338 = vector.extract_strided_slice %0 {offsets = [0, 2], sizes = [32, 1], strides = [1, 1]} : vector<32x3xf32> to vector<32x1xf32>
    %339 = vector.extract_strided_slice %326 {offsets = [2, 0], sizes = [1, 128], strides = [1, 1]} : vector<3x128xf32> to vector<1x128xf32>
    %340 = vector.broadcast %338 : vector<32x1xf32> to vector<32x128xf32>
    %341 = vector.broadcast %339 : vector<1x128xf32> to vector<32x128xf32>
    %342 = arith.mulf %340, %341 : vector<32x128xf32>
    %343 = arith.addf %337, %342 : vector<32x128xf32>
    %344 = vector.broadcast %1 : vector<32x1xf32> to vector<32x128xf32>
    %345 = arith.addf %343, %344 : vector<32x128xf32>
    %346 = math.tanh %345 : vector<32x128xf32>
    %347 = vector.broadcast %2 : vector<32x1xf32> to vector<32x128xf32>
    %348 = arith.mulf %347, %346 : vector<32x128xf32>
    %cst_56 = arith.constant dense<0.000000e+00> : vector<128xf32>
    %349 = vector.multi_reduction <add>, %348, %cst_56 [0] : vector<32x128xf32> to vector<128xf32>
    %350 = vector.shape_cast %349 : vector<128xf32> to vector<1x128xf32>
    %351 = arith.addf %305, %350 : vector<1x128xf32>
    %352 = arith.mulf %346, %348 : vector<32x128xf32>
    %353 = vector.broadcast %2 : vector<32x1xf32> to vector<32x128xf32>
    %354 = arith.subf %353, %352 : vector<32x128xf32>
    %355 = vector.extract_strided_slice %4 {offsets = [0, 0], sizes = [32, 1], strides = [1, 1]} : vector<32x3xf32> to vector<32x1xf32>
    %356 = vector.broadcast %355 : vector<32x1xf32> to vector<32x128xf32>
    %357 = arith.mulf %356, %354 : vector<32x128xf32>
    %cst_57 = arith.constant dense<0.000000e+00> : vector<128xf32>
    %358 = vector.multi_reduction <add>, %357, %cst_57 [0] : vector<32x128xf32> to vector<128xf32>
    %359 = vector.shape_cast %358 : vector<128xf32> to vector<1x128xf32>
    %360 = vector.extract_strided_slice %4 {offsets = [0, 1], sizes = [32, 1], strides = [1, 1]} : vector<32x3xf32> to vector<32x1xf32>
    %361 = vector.broadcast %360 : vector<32x1xf32> to vector<32x128xf32>
    %362 = arith.mulf %361, %354 : vector<32x128xf32>
    %cst_58 = arith.constant dense<0.000000e+00> : vector<128xf32>
    %363 = vector.multi_reduction <add>, %362, %cst_58 [0] : vector<32x128xf32> to vector<128xf32>
    %364 = vector.shape_cast %363 : vector<128xf32> to vector<1x128xf32>
    %365 = vector.extract_strided_slice %4 {offsets = [0, 2], sizes = [32, 1], strides = [1, 1]} : vector<32x3xf32> to vector<32x1xf32>
    %366 = vector.broadcast %365 : vector<32x1xf32> to vector<32x128xf32>
    %367 = arith.mulf %366, %354 : vector<32x128xf32>
    %cst_59 = arith.constant dense<0.000000e+00> : vector<128xf32>
    %368 = vector.multi_reduction <add>, %367, %cst_59 [0] : vector<32x128xf32> to vector<128xf32>
    %369 = vector.shape_cast %368 : vector<128xf32> to vector<1x128xf32>
    %370 = tpu.concatenate %359, %364, %369 in 0 : vector<1x128xf32>, vector<1x128xf32>, vector<1x128xf32> -> vector<3x128xf32>
    %c0_60 = arith.constant 0 : index
    %c896_61 = arith.constant 896 : index
    %371 = vector.load %arg6[%c0_60, %c896_61] : memref<3x1024xf32, #tpu.memory_space<vmem>>, vector<3x128xf32>
    tpu.vector_store %arg6[%c0_60, %c896_61], %370 {strides = array<i32>} : memref<3x1024xf32, #tpu.memory_space<vmem>>, vector<3x128xf32>,
    %c0_62 = arith.constant 0 : index
    %c0_63 = arith.constant 0 : index
    %372 = vector.load %arg5[%c0_62, %c0_63] : memref<1x128xf32, #tpu.memory_space<vmem>>, vector<1x128xf32>
    tpu.vector_store %arg5[%c0_62, %c0_63], %351 {strides = array<i32>} : memref<1x128xf32, #tpu.memory_space<vmem>>, vector<1x128xf32>,
    return
  }
  func.func @transform_0(%arg0: i32) -> (i32, i32) {
    %c0_i32 = arith.constant 0 : i32
    %c0_i32_0 = arith.constant 0 : i32
    return %c0_i32, %arg0 : i32, i32
  }
  func.func @transform_1(%arg0: i32) -> (i32, i32) {
    %c0_i32 = arith.constant 0 : i32
    %c0_i32_0 = arith.constant 0 : i32
    %c0_i32_1 = arith.constant 0 : i32
    return %c0_i32, %c0_i32_0 : i32, i32
  }
  func.func @transform_2(%arg0: i32) -> (i32, i32) {
    %c0_i32 = arith.constant 0 : i32
    %c0_i32_0 = arith.constant 0 : i32
    %c0_i32_1 = arith.constant 0 : i32
    return %c0_i32, %c0_i32_0 : i32, i32
  }
  func.func @transform_3(%arg0: i32) -> (i32, i32) {
    %c0_i32 = arith.constant 0 : i32
    %c0_i32_0 = arith.constant 0 : i32
    %c0_i32_1 = arith.constant 0 : i32
    return %c0_i32, %c0_i32_0 : i32, i32
  }
  func.func @transform_4(%arg0: i32) -> (i32, i32) {
    %c0_i32 = arith.constant 0 : i32
    %c0_i32_0 = arith.constant 0 : i32
    return %c0_i32, %arg0 : i32, i32
  }
  func.func @transform_5(%arg0: i32) -> (i32, i32) {
    %c0_i32 = arith.constant 0 : i32
    %c0_i32_0 = arith.constant 0 : i32
    return %c0_i32, %arg0 : i32, i32
  }
}

</mosaic_0001>

<bundles_post_ra>
// kernel: base_force_model_forward.1
= control target key start
LH: loop header
LB: loop body
LE: loop exit
PB: predicated region body
PF: predicated region fallthrough
CT: control target
= control target key end

     0   :  { %v1112_v0 = vmov 2   ;;  %v1113_v1 = vmov 0   ;;  %v1114_v5 = vmov 1   ;;  %v56_v19 = vlaneseq  ;;  %s2176_s1 = inlined_call_operand.vmem [shape: f32[32,3], index: 1, kind: input, shape index: {}]   ;;  %s2177_s2 = inlined_call_operand.vmem [shape: f32[32,1], index: 2, kind: input, shape index: {}]   ;;  %s2178_s3 = inlined_call_operand.vmem [shape: f32[32,1], index: 3, kind: input, shape index: {}]   ;;  %s2179_s0 = inlined_call_operand.vmem [shape: f32[3,1024], index: 0, kind: input, shape index: {}]   ;;  %s2180_s4 = inlined_call_operand.vmem [shape: f32[1,128], index: 4, kind: output, shape index: {0}]   ;;  %s2181_s5 = inlined_call_operand.vmem [shape: f32[3,1024], index: 5, kind: output, shape index: {1}]  }
   0x1   :  { %1035 = vset.pattern.permute.xlu0 %v1112_v0  ;;  %1032 = vset.pattern.permute.xlu1 %v1113_v1  ;;  %v21_v2 = vld [vmem:[%s2176_s1 + $0x10] sm:$0xff]  ;;  %v20_v3 = vld [vmem:[%s2176_s1 + $0x8] sm:$0xff]  ;;  %v19_v4 = vld [vmem:[%s2176_s1] sm:$0xff]  ;;  %vm280_vm0 = vcmask 1040384   ;;  %vm282_vm1 = vcmask 1041408  }
   0x2   :  { %48 = vperm.xlu1 %1032, %v21_v2   ;;  %97 = vperm.xlu0 %1035, %v20_v3   ;;  %v32_v6 = vsub.f32 0.0, %v20_v3  ;;  %v22_v7 = vld [vmem:[%s2176_s1 + $0x18] sm:$0xff]  ;;  %v23_v8 = vld [vmem:[%s2177_s2] sm:$0xff]  ;;  %v28_v10 = vld [vmem:[%s2178_s3 + $0x8] sm:$0xff]  ;;  %v33_v15 = vsub.f32 0.0, %v21_v2  ;;  %v31_v18 = vsub.f32 0.0, %v19_v4 }
   0x3   :  { %v26_v9 = vld [vmem:[%s2177_s2 + $0x18] sm:$0xff]  ;;  %v24_v11 = vld [vmem:[%s2177_s2 + $0x8] sm:$0xff]  ;;  %v25_v13 = vld [vmem:[%s2177_s2 + $0x10] sm:$0xff]  ;;  %v34_v17 = vsub.f32 0.0, %v22_v7  ;;  %v57_v20 = vshrl.u32 %v56_v19, 7 }
   0x4   :  { %v30_v12 = vld [vmem:[%s2178_s3 + $0x18] sm:$0xff]  ;;  %v27_v14 = vld [vmem:[%s2178_s3] sm:$0xff]  ;;  %v29_v16 = vld [vmem:[%s2178_s3 + $0x10] sm:$0xff] }
   0x5   :  { %v58_v21 = vsub.s32 0, %v57_v20  ;;  %v35_v22 = vld [vmem:[%s2179_s0] sm:$0x7]  ;;  %v285_v23 = vld [vmem:[%s2179_s0 + $0x4] sm:$0x7]  ;;  %v110_v24 = vsub.s32 2, %v57_v20 }
   0x6   :  { %1033 = vset.pattern.permute.xlu1 %v1114_v5  ;;  %101 = vperm.xlu0 %1035, %v21_v2   ;;  %v390_v25 = vld [vmem:[%s2179_s0 + $0x8] sm:$0x7]  ;;  %v495_v26 = vld [vmem:[%s2179_s0 + $0xc] sm:$0x7]  ;;  %v600_v27 = vld [vmem:[%s2179_s0 + $0x10] sm:$0x7] }
   0x7   :  { %65 = vperm.xlu1 %1033, %v19_v4   ;;  %v705_v28 = vld [vmem:[%s2179_s0 + $0x14] sm:$0x7]  ;;  %v810_v29 = vld [vmem:[%s2179_s0 + $0x18] sm:$0x7]  ;;  %v915_v30 = vld [vmem:[%s2179_s0 + $0x1c] sm:$0x7]  ;;  %v1211_v31 = vrot.slane %v35_v22, %v58_v21  ;;  %v1213_v33 = vrot.slane %v285_v23, %v58_v21  ;;  %v1215_v34 = vrot.slane %v390_v25, %v58_v21  ;;  %v1217_v35 = vrot.slane %v495_v26, %v58_v21 }
   0x8   :  { %v82_v32 = vsub.s32 1, %v57_v20  ;;  %v1219_v36 = vrot.slane %v600_v27, %v58_v21  ;;  %v1221_v37 = vrot.slane %v705_v28, %v58_v21  ;;  %v1223_v38 = vrot.slane %v810_v29, %v58_v21 }
   0x9   :  { %v1225_v39 = vrot.slane %v915_v30, %v58_v21  ;;  %v1227_v40 = vrot.slane %v35_v22, %v110_v24  ;;  %v1229_v43 = vrot.slane %v285_v23, %v110_v24  ;;  %v1231_v44 = vrot.slane %v390_v25, %v110_v24 }
   0xa   :  { %1038 = vset.pattern.permute.xlu0 %v1114_v5  ;;  %v1233_v45 = vrot.slane %v495_v26, %v110_v24  ;;  %v1235_v46 = vrot.slane %v600_v27, %v110_v24  ;;  %v1237_v47 = vrot.slane %v705_v28, %v110_v24  ;;  %v1239_v48 = vrot.slane %v810_v29, %v110_v24 }
   0xb   :  { %69 = vperm.xlu0 %1038, %v20_v3   ;;  %73 = vperm.xlu1 %1033, %v21_v2   ;;  %2232 = vst [vmem:[#allocation2_spill] sm:$0xff] %v1231_v44  ;;  %v1241_v49 = vrot.slane %v915_v30, %v110_v24  ;;  %v1243_v50 = vrot.slane %v35_v22, %v82_v32 }
   0xc   :  { %2233 = vst [vmem:[#allocation3_spill] sm:$0xff] %v1233_v45  ;;  %2234 = vst [vmem:[#allocation4_spill] sm:$0xff] %v1235_v46  ;;  %v1245_v51 = vrot.slane %v285_v23, %v82_v32  ;;  %v1247_v52 = vrot.slane %v390_v25, %v82_v32  ;;  %v1249_v53 = vrot.slane %v495_v26, %v82_v32 }
   0xd   :  { %2235 = vst [vmem:[#allocation5_spill] sm:$0xff] %v1237_v47  ;;  %2236 = vst [vmem:[#allocation6_spill] sm:$0xff] %v1239_v48  ;;  %v1251_v54 = vrot.slane %v600_v27, %v82_v32  ;;  %v1254_v56 = vrot.slane %v705_v28, %v82_v32  ;;  %v1256_v57 = vrot.slane %v810_v29, %v82_v32 }
   0xe   :  { %v1258_v58 = vrot.slane %v915_v30, %v82_v32 }
   0xf   :  { %227 = vperm.xlu0 %1038, %v32_v6   ;;  %1034 = vset.pattern.permute.xlu1 %v1112_v0 }
  0x10   :  { %93 = vperm.xlu1 %1034, %v19_v4  }
  0x13   :  { %1042 = vset.pattern.permute.xlu0 %v1113_v1 }
  0x14   :  { %38 = vperm.xlu0 %1042, %v19_v4   ;;  %1036 = vset.pattern.permute.xlu1 %v1113_v1 }
  0x15   :  { %53 = vperm.xlu1 %1036, %v22_v7  }
  0x18   :  { %43 = vperm.xlu0 %1042, %v20_v3  }
  0x19   :  { %1037 = vset.pattern.permute.xlu1 %v1114_v5 }
  0x1a   :  { %77 = vperm.xlu1 %1037, %v22_v7  }
  0x1c   :  { %122 = vperm.xlu0 %1042, %v23_v8  }
  0x1e   :  { %1039 = vset.pattern.permute.xlu1 %v1112_v0 }
  0x1f   :  { %105 = vperm.xlu1 %1039, %v22_v7  }
  0x20   :  { %137 = vperm.xlu0 %1042, %v26_v9  }
  0x23   :  { %1040 = vset.pattern.permute.xlu1 %v1113_v1 }
  0x24   :  { %155 = vperm.xlu0 %1042, %v28_v10   ;;  %127 = vperm.xlu1 %1040, %v24_v11  }
  0x28   :  { %165 = vperm.xlu0 %1042, %v30_v12   ;;  %132 = vperm.xlu1 %1040, %v25_v13  }
  0x2c   :  { %196 = vperm.xlu0 %1042, %v32_v6   ;;  %150 = vperm.xlu1 %1040, %v27_v14  }
  0x30   :  { %201 = vperm.xlu0 %1042, %v33_v15   ;;  %160 = vperm.xlu1 %1040, %v29_v16  }
  0x34   :  { %206 = vperm.xlu0 %1042, %v34_v17   ;;  %191 = vperm.xlu1 %1040, %v31_v18  }
  0x38   :  { %1047 = vset.pattern.permute.xlu0 %v1112_v0  ;;  %1041 = vset.pattern.permute.xlu1 %v1114_v5 }
  0x39   :  { %264 = vperm.xlu0 %1047, %v34_v17   ;;  %223 = vperm.xlu1 %1041, %v31_v18  }
  0x3d   :  { %1043 = vset.pattern.permute.xlu1 %v1112_v0 }
  0x3e   :  { %252 = vperm.xlu1 %1043, %v31_v18  }
  0x42   :  { %256 = vperm.xlu1 %1043, %v32_v6  }
  0x46   :  { %1044 = vset.pattern.permute.xlu1 %v1114_v5 }
  0x47   :  { %231 = vperm.xlu1 %1044, %v33_v15  }
  0x4b   :  { %1045 = vset.pattern.permute.xlu1 %v1112_v0 }
  0x4c   :  { %260 = vperm.xlu1 %1045, %v33_v15  }
  0x50   :  { %1046 = vset.pattern.permute.xlu1 %v1114_v5 }
  0x51   :  { %235 = vperm.xlu1 %1046, %v34_v17  }
  0x81   :  { %v49_v41 = vpop.permute.xlu1 %48  ;;  %v98_v42 = vpop.permute.xlu0 %97 }
  0x82   :  { %v62_v55 = vmul.f32 %v1211_v31, %v49_v41  ;;  %v292_v59 = vmul.f32 %v1213_v33, %v49_v41  ;;  %v397_v60 = vmul.f32 %v1215_v34, %v49_v41  ;;  %v502_v61 = vmul.f32 %v1217_v35, %v49_v41 }
  0x83   :  { %v607_v62 = vmul.f32 %v1219_v36, %v49_v41  ;;  %v712_v0 = vmul.f32 %v1221_v37, %v49_v41  ;;  %v817_v1 = vmul.f32 %v1223_v38, %v49_v41  ;;  %v922_v2 = vmul.f32 %v1225_v39, %v49_v41 }
  0x84   :  { %v1268_v3 = vmul.f32 %v1227_v40, %v98_v42  ;;  %v1271_v5 = vmul.f32 %v1229_v43, %v98_v42  ;;  %v1274_v6 = vmul.f32 %v1231_v44, %v98_v42  ;;  %v1277_v7 = vmul.f32 %v1233_v45, %v98_v42 }
  0x85   :  { %v102_v63 = vpop.permute.xlu0 %101  ;;  %v1280_v8 = vmul.f32 %v1235_v46, %v98_v42  ;;  %v1283_v9 = vmul.f32 %v1237_v47, %v98_v42  ;;  %v1286_v10 = vmul.f32 %v1239_v48, %v98_v42  ;;  %v1289_v11 = vmul.f32 %v1241_v49, %v98_v42 }
  0x86   :  { %2237 = vst [vmem:[#allocation7_spill] sm:$0xff] %v1268_v3  ;;  %v66_v4 = vpop.permute.xlu1 %65  ;;  %2238 = vst [vmem:[#allocation8_spill] sm:$0xff] %v1271_v5  ;;  %v114_v12 = vmul.f32 %v1227_v40, %v102_v63  ;;  %v1294_v14 = vmul.f32 %v1229_v43, %v102_v63  ;;  %v1297_v15 = vmul.f32 %v1231_v44, %v102_v63 }
  0x87   :  { %2239 = vst [vmem:[#allocation9_spill] sm:$0xff] %v1274_v6  ;;  %2240 = vst [vmem:[#allocation10_spill] sm:$0xff] %v1277_v7  ;;  %v84_v13 = vmul.f32 %v1243_v50, %v66_v4  ;;  %v1300_v16 = vmul.f32 %v1233_v45, %v102_v63  ;;  %v1303_v17 = vmul.f32 %v1245_v51, %v66_v4 }
  0x88   :  { %2241 = vst [vmem:[#allocation11_spill] sm:$0xff] %v1280_v8  ;;  %2242 = vst [vmem:[#allocation12_spill] sm:$0xff] %v1283_v9  ;;  %v1306_v18 = vmul.f32 %v1247_v52, %v66_v4  ;;  %v1309_v19 = vmul.f32 %v1249_v53, %v66_v4  ;;  %v1312_v20 = vmul.f32 %v1251_v54, %v66_v4 }
  0x89   :  { %2243 = vst [vmem:[#allocation13_spill] sm:$0xff] %v1286_v10  ;;  %2244 = vst [vmem:[#allocation14_spill] sm:$0xff] %v1289_v11  ;;  %v718_v32 = vmul.f32 %v1254_v56, %v66_v4  ;;  %v823_v41 = vmul.f32 %v1256_v57, %v66_v4  ;;  %v928_v42 = vmul.f32 %v1258_v58, %v66_v4 }
  0x8a   :  { %2245 = vst [vmem:[#allocation15_spill] sm:$0xff] %v1309_v19  ;;  %2246 = vst [vmem:[#allocation16_spill] sm:$0xff] %v1312_v20  ;;  %v74_v21 = vpop.permute.xlu1 %73  ;;  %v70_v22 = vpop.permute.xlu0 %69  ;;  %v1326_v11 = vmul.f32 %v1235_v46, %v102_v63  ;;  %v1329_v10 = vmul.f32 %v1237_v47, %v102_v63  ;;  %v1332_v9 = vmul.f32 %v1239_v48, %v102_v63 }
  0x8b   :  { %v86_v23 = vmul.f32 %v1243_v50, %v74_v21  ;;  %v300_v24 = vmul.f32 %v1245_v51, %v74_v21  ;;  %v405_v25 = vmul.f32 %v1247_v52, %v74_v21  ;;  %v510_v26 = vmul.f32 %v1249_v53, %v74_v21 }
  0x8c   :  { %v615_v27 = vmul.f32 %v1251_v54, %v74_v21  ;;  %v720_v28 = vmul.f32 %v1254_v56, %v74_v21  ;;  %v825_v29 = vmul.f32 %v1256_v57, %v74_v21  ;;  %v930_v30 = vmul.f32 %v1258_v58, %v74_v21  ;;  %2247 = vst [vmem:[#allocation17_spill] sm:$0xff] %v1326_v11 }
  0x8d   :  { %2248 = vst [vmem:[#allocation18_spill] sm:$0xff] %v1329_v10  ;;  %2249 = vst [vmem:[#allocation19_spill] sm:$0xff] %v1332_v9  ;;  %v1335_v8 = vmul.f32 %v1241_v49, %v102_v63  ;;  %v90_v7 = vadd.f32 %v86_v23, %v62_v55  ;;  %v304_v6 = vadd.f32 %v300_v24, %v292_v59 }
  0x8e   :  { %v1337_v21 = vpop.permute.xlu0 %227  ;;  %v409_v5 = vadd.f32 %v405_v25, %v397_v60  ;;  %v514_v3 = vadd.f32 %v510_v26, %v502_v61  ;;  %v1339_v20 = vadd.f32 %v615_v27, %v607_v62  ;;  %v1341_v19 = vadd.f32 %v720_v28, %v712_v0 }
  0x8f   :  { %2250 = vst [vmem:[#allocation20_spill] sm:$0xff] %v1335_v8  ;;  %2251 = vst [vmem:[#allocation21_spill] sm:$0xff] %v1337_v21  ;;  %v94_v4 = vpop.permute.xlu1 %93  ;;  %v1343_v11 = vadd.f32 %v825_v29, %v817_v1  ;;  %v1345_v10 = vadd.f32 %v930_v30, %v922_v2  ;;  %v85_v9 = vmul.f32 %v1243_v50, %v70_v22 }
  0x90   :  { %2252 = vst [vmem:[#allocation22_spill] sm:$0xff] %v1339_v20  ;;  %2253 = vst [vmem:[#allocation23_spill] sm:$0xff] %v1341_v19  ;;  %v299_v63 = vmul.f32 %v1245_v51, %v70_v22  ;;  %v404_v55 = vmul.f32 %v1247_v52, %v70_v22  ;;  %v1351_v23 = vmul.f32 %v1249_v53, %v70_v22 }
  0x91   :  { %2254 = vst [vmem:[#allocation24_spill] sm:$0xff] %v1343_v11  ;;  %2255 = vst [vmem:[#allocation25_spill] sm:$0xff] %v1345_v10  ;;  %v1354_v59 = vmul.f32 %v1251_v54, %v70_v22  ;;  %v1357_v60 = vmul.f32 %v1254_v56, %v70_v22  ;;  %v1360_v61 = vmul.f32 %v1256_v57, %v70_v22 }
  0x92   :  { %2256 = vst [vmem:[#allocation26_spill] sm:$0xff] %v1351_v23  ;;  %v1363_v62 = vmul.f32 %v1258_v58, %v70_v22  ;;  %v1366_v0 = vmul.f32 %v1227_v40, %v94_v4  ;;  %v1369_v1 = vmul.f32 %v1229_v43, %v94_v4  ;;  %v1372_v2 = vmul.f32 %v1231_v44, %v94_v4 }
  0x93   :  { %2257 = vst [vmem:[#allocation27_spill] sm:$0xff] %v1354_v59  ;;  %2258 = vst [vmem:[#allocation28_spill] sm:$0xff] %v1357_v60  ;;  %v1375_v24 = vmul.f32 %v1233_v45, %v94_v4  ;;  %v1378_v25 = vmul.f32 %v1235_v46, %v94_v4  ;;  %v39_v26 = vpop.permute.xlu0 %38  ;;  %v730_v19 = vmul.f32 %v1237_v47, %v94_v4 }
  0x94   :  { %2259 = vst [vmem:[#allocation29_spill] sm:$0xff] %v1360_v61  ;;  %2260 = vst [vmem:[#allocation30_spill] sm:$0xff] %v1363_v62  ;;  %v60_v27 = vmul.f32 %v1211_v31, %v39_v26  ;;  %v290_v22 = vmul.f32 %v1213_v33, %v39_v26  ;;  %v395_v28 = vmul.f32 %v1215_v34, %v39_v26  ;;  %v54_v30 = vpop.permute.xlu1 %53 }
  0x95   :  { %v500_v29 = vmul.f32 %v1217_v35, %v39_v26  ;;  %v605_v21 = vmul.f32 %v1219_v36, %v39_v26  ;;  %v710_v8 = vmul.f32 %v1221_v37, %v39_v26  ;;  %v815_v10 = vmul.f32 %v1223_v38, %v39_v26 }
  0x96   :  { %v920_v11 = vmul.f32 %v1225_v39, %v39_v26  ;;  %v835_v20 = vmul.f32 %v1239_v48, %v94_v4  ;;  %v940_v62 = vmul.f32 %v1241_v49, %v94_v4  ;;  %v1391_v61 = vadd.f32 %v114_v12, %v90_v7  ;;  %v2262_v48 = vld [vmem:[#allocation15_spill] sm:$0xff]  ;;  %v2263_v4 = vld [vmem:[#allocation16_spill] sm:$0xff] }
  0x97   :  { %v88_v60 = vadd.f32 %v84_v13, %v60_v27  ;;  %v44_v59 = vpop.permute.xlu0 %43  ;;  %v1394_v23 = vadd.f32 %v1294_v14, %v304_v6  ;;  %v1397_v46 = vadd.f32 %v1297_v15, %v409_v5  ;;  %v1400_v45 = vadd.f32 %v1300_v16, %v514_v3 }
  0x98   :  { %v302_v26 = vadd.f32 %v1303_v17, %v290_v22  ;;  %v407_v47 = vadd.f32 %v1306_v18, %v395_v28  ;;  %v512_v44 = vadd.f32 %v2262_v48, %v500_v29  ;;  %v617_v7 = vadd.f32 %v2263_v4, %v605_v21 }
  0x99   :  { %2261 = vst [vmem:[#allocation31_spill] sm:$0xff] %v1400_v45  ;;  %v722_v12 = vadd.f32 %v718_v32, %v710_v8  ;;  %v827_v13 = vadd.f32 %v823_v41, %v815_v10  ;;  %v932_v27 = vadd.f32 %v928_v42, %v920_v11  ;;  %v63_v6 = vmul.f32 %v1211_v31, %v54_v30  ;;  %v78_v16 = vpop.permute.xlu1 %77 }
  0x9a   :  { %v293_v14 = vmul.f32 %v1213_v33, %v54_v30  ;;  %v398_v5 = vmul.f32 %v1215_v34, %v54_v30  ;;  %v503_v3 = vmul.f32 %v1217_v35, %v54_v30  ;;  %v61_v15 = vmul.f32 %v1211_v31, %v44_v59 }
  0x9b   :  { %v608_v17 = vmul.f32 %v1219_v36, %v54_v30  ;;  %v713_v48 = vmul.f32 %v1221_v37, %v54_v30  ;;  %v291_v18 = vmul.f32 %v1213_v33, %v44_v59  ;;  %v396_v8 = vmul.f32 %v1215_v34, %v44_v59  ;;  %v123_v21 = vpop.permute.xlu0 %122 }
  0x9c   :  { %v818_v10 = vmul.f32 %v1223_v38, %v54_v30  ;;  %v1417_v11 = vmul.f32 %v1225_v39, %v54_v30  ;;  %v1420_v32 = vmul.f32 %v1217_v35, %v44_v59  ;;  %v1423_v41 = vmul.f32 %v1219_v36, %v44_v59 }
  0x9d   :  { %v1425_v31 = vadd.f32 %v85_v9, %v61_v15  ;;  %v1428_v42 = vmul.f32 %v1221_v37, %v44_v59  ;;  %v1431_v33 = vmul.f32 %v1223_v38, %v44_v59  ;;  %v1434_v34 = vmul.f32 %v1225_v39, %v44_v59 }
  0x9e   :  { %v87_v22 = vmul.f32 %v1243_v50, %v78_v16  ;;  %v301_v35 = vmul.f32 %v1245_v51, %v78_v16  ;;  %v406_v28 = vmul.f32 %v1247_v52, %v78_v16  ;;  %v511_v36 = vmul.f32 %v1249_v53, %v78_v16  ;;  %v106_v4 = vpop.permute.xlu1 %105 }
  0x9f   :  { %v1440_v9 = vadd.f32 %v299_v63, %v291_v18  ;;  %v1442_v29 = vadd.f32 %v404_v55, %v396_v8  ;;  %v616_v37 = vmul.f32 %v1251_v54, %v78_v16  ;;  %v721_v38 = vmul.f32 %v1254_v56, %v78_v16  ;;  %v138_v18 = vpop.permute.xlu0 %137 }
  0xa0   :  { %v91_v30 = vadd.f32 %v87_v22, %v63_v6  ;;  %v305_v39 = vadd.f32 %v301_v35, %v293_v14  ;;  %v826_v59 = vmul.f32 %v1256_v57, %v78_v16  ;;  %v931_v50 = vmul.f32 %v1258_v58, %v78_v16 }
  0xa1   :  { %v410_v51 = vadd.f32 %v406_v28, %v398_v5  ;;  %v515_v15 = vadd.f32 %v511_v36, %v503_v3  ;;  %v620_v52 = vadd.f32 %v616_v37, %v608_v17  ;;  %v725_v45 = vadd.f32 %v721_v38, %v713_v48 }
  0xa2   :  { %v116_v53 = vadd.f32 %v1366_v0, %v88_v60  ;;  %v314_v63 = vadd.f32 %v1369_v1, %v302_v26  ;;  %v419_v55 = vadd.f32 %v1372_v2, %v407_v47  ;;  %v524_v54 = vadd.f32 %v1375_v24, %v512_v44  ;;  %v2264_v44 = vld [vmem:[#allocation2_spill] sm:$0xff] }
  0xa3   :  { %v629_v56 = vadd.f32 %v1378_v25, %v617_v7  ;;  %v734_v6 = vadd.f32 %v730_v19, %v722_v12  ;;  %v839_v14 = vadd.f32 %v835_v20, %v827_v13  ;;  %v944_v57 = vadd.f32 %v940_v62, %v932_v27  ;;  %v1456_v2 = vpop.permute.xlu1 %127  ;;  %v2265_v19 = vld [vmem:[#allocation3_spill] sm:$0xff]  ;;  %v2266_v62 = vld [vmem:[#allocation4_spill] sm:$0xff]  ;;  %v2267_v25 = vld [vmem:[#allocation5_spill] sm:$0xff]  ;;  %v1463_v22 = vpop.permute.xlu0 %155 }
  0xa4   :  { %v140_v58 = vadd.f32 %v123_v21, %v116_v53  ;;  %v318_v16 = vadd.f32 %v314_v63, %v123_v21  ;;  %v423_v5 = vadd.f32 %v419_v55, %v123_v21  ;;  %v528_v3 = vadd.f32 %v524_v54, %v123_v21  ;;  %v2268_v7 = vld [vmem:[#allocation6_spill] sm:$0xff] }
  0xa5   :  { %v633_v17 = vadd.f32 %v629_v56, %v123_v21  ;;  %v738_v48 = vadd.f32 %v734_v6, %v123_v21  ;;  %v843_v8 = vadd.f32 %v839_v14, %v123_v21  ;;  %v948_v60 = vadd.f32 %v944_v57, %v123_v21  ;;  %v2269_v63 = vld [vmem:[#allocation26_spill] sm:$0xff]  ;;  %v2274_v6 = vld [vmem:[#allocation7_spill] sm:$0xff] }
  0xa6   :  { %1048 = vtanh.f32 %v140_v58  ;;  %v115_v0 = vmul.f32 %v1227_v40, %v106_v4  ;;  %v313_v47 = vmul.f32 %v1229_v43, %v106_v4  ;;  %v418_v1 = vmul.f32 %v2264_v44, %v106_v4 }
  0xa7   :  { %1050 = vtanh.f32 %v318_v16  ;;  %v523_v20 = vmul.f32 %v2265_v19, %v106_v4  ;;  %v628_v24 = vmul.f32 %v2266_v62, %v106_v4  ;;  %v733_v26 = vmul.f32 %v2267_v25, %v106_v4 }
  0xa8   :  { %1052 = vtanh.f32 %v423_v5  ;;  %v838_v12 = vmul.f32 %v2268_v7, %v106_v4  ;;  %v943_v13 = vmul.f32 %v1241_v49, %v106_v4  ;;  %v119_v27 = vadd.f32 %v115_v0, %v91_v30  ;;  %v2270_v4 = vld [vmem:[#allocation27_spill] sm:$0xff] }
  0xa9   :  { %1054 = vtanh.f32 %v528_v3  ;;  %v317_v40 = vadd.f32 %v313_v47, %v305_v39  ;;  %v422_v43 = vadd.f32 %v418_v1, %v410_v51  ;;  %v527_v21 = vadd.f32 %v523_v20, %v515_v15  ;;  %v1468_v39 = vpop.permute.xlu1 %132  ;;  %v2271_v15 = vld [vmem:[#allocation28_spill] sm:$0xff]  ;;  %v2278_v47 = vld [vmem:[#allocation11_spill] sm:$0xff]  ;;  %v2280_v20 = vld [vmem:[#allocation13_spill] sm:$0xff] }
  0xaa   :  { %v830_v35 = vadd.f32 %v826_v59, %v818_v10  ;;  %1056 = vtanh.f32 %v633_v17  ;;  %v143_v28 = vadd.f32 %v138_v18, %v119_v27  ;;  %v632_v36 = vadd.f32 %v628_v24, %v620_v52 }
  0xab   :  { %v935_v37 = vadd.f32 %v931_v50, %v1417_v11  ;;  %1058 = vtanh.f32 %v738_v48  ;;  %v321_v38 = vadd.f32 %v317_v40, %v138_v18  ;;  %v737_v53 = vadd.f32 %v733_v26, %v725_v45  ;;  %v2272_v50 = vld [vmem:[#allocation29_spill] sm:$0xff]  ;;  %v2277_v48 = vld [vmem:[#allocation10_spill] sm:$0xff] }
  0xac   :  { %v513_v55 = vadd.f32 %v2269_v63, %v1420_v32  ;;  %1060 = vtanh.f32 %v843_v8  ;;  %v426_v49 = vadd.f32 %v422_v43, %v138_v18  ;;  %v842_v30 = vadd.f32 %v838_v12, %v830_v35  ;;  %v2273_v32 = vld [vmem:[#allocation30_spill] sm:$0xff] }
  0xad   :  { %v618_v51 = vadd.f32 %v2270_v4, %v1423_v41  ;;  %1062 = vtanh.f32 %v948_v60  ;;  %v531_v10 = vadd.f32 %v527_v21, %v138_v18  ;;  %v947_v59 = vadd.f32 %v943_v13, %v935_v37  ;;  %v1480_v41 = vpop.permute.xlu0 %165  ;;  %v2281_v26 = vld [vmem:[#allocation14_spill] sm:$0xff] }
  0xae   :  { %v723_v11 = vadd.f32 %v2271_v15, %v1428_v42  ;;  %v828_v45 = vadd.f32 %v2272_v50, %v1431_v33  ;;  %1064 = vtanh.f32 %v143_v28  ;;  %v636_v52 = vadd.f32 %v632_v36, %v138_v18  ;;  %v2275_v42 = vld [vmem:[#allocation8_spill] sm:$0xff]  ;;  %v2276_v33 = vld [vmem:[#allocation9_spill] sm:$0xff] }
  0xaf   :  { %v933_v54 = vadd.f32 %v2273_v32, %v1434_v34  ;;  %1066 = vtanh.f32 %v321_v38  ;;  %v741_v56 = vadd.f32 %v737_v53, %v138_v18  ;;  %v117_v14 = vadd.f32 %v2274_v6, %v1425_v31  ;;  %v2283_v38 = vld [vmem:[#allocation22_spill] sm:$0xff]  ;;  %v2284_v53 = vld [vmem:[#allocation17_spill] sm:$0xff] }
  0xb0   :  { %v1049_v57 = vpop.eup %1048  ;;  %1068 = vtanh.f32 %v426_v49  ;;  %v846_v58 = vadd.f32 %v842_v30, %v138_v18  ;;  %v315_v16 = vadd.f32 %v2275_v42, %v1440_v9  ;;  %v420_v5 = vadd.f32 %v2276_v33, %v1442_v29  ;;  %v1493_v9 = vpop.permute.xlu1 %150  ;;  %v2290_v15 = vld [vmem:[#allocation25_spill] sm:$0xff] }
  0xb1   :  { %v1051_v3 = vpop.eup %1050  ;;  %1070 = vtanh.f32 %v531_v10  ;;  %v951_v17 = vadd.f32 %v947_v59, %v138_v18  ;;  %v141_v34 = vadd.f32 %v1456_v2, %v117_v14  ;;  %v525_v8 = vadd.f32 %v2277_v48, %v513_v55  ;;  %v2279_v18 = vld [vmem:[#allocation12_spill] sm:$0xff]  ;;  %v1512_v21 = vpop.permute.xlu0 %196  ;;  %v2286_v55 = vld [vmem:[#allocation18_spill] sm:$0xff]  ;;  %v2289_v10 = vld [vmem:[#allocation19_spill] sm:$0xff] }
  0xb2   :  { %v1488_v60 = vpop.eup %1052  ;;  %1072 = vtanh.f32 %v636_v52  ;;  %v319_v31 = vadd.f32 %v315_v16, %v1456_v2  ;;  %v424_v0 = vadd.f32 %v420_v5, %v1456_v2  ;;  %v630_v44 = vadd.f32 %v2278_v47, %v618_v51  ;;  %v2288_v51 = vld [vmem:[#allocation24_spill] sm:$0xff] }
  0xb3   :  { %v1495_v1 = vpop.eup %1054  ;;  %1074 = vtanh.f32 %v741_v56  ;;  %v529_v29 = vadd.f32 %v525_v8, %v1456_v2  ;;  %v735_v19 = vadd.f32 %v2279_v18, %v723_v11  ;;  %v840_v62 = vadd.f32 %v2280_v20, %v828_v45  ;;  %v2291_v11 = vld [vmem:[#allocation20_spill] sm:$0xff] }
  0xb4   :  { %v1500_v24 = vpop.eup %1056  ;;  %1076 = vtanh.f32 %v846_v58  ;;  %v634_v25 = vadd.f32 %v630_v44, %v1456_v2  ;;  %v945_v7 = vadd.f32 %v2281_v26, %v933_v54  ;;  %v142_v12 = vadd.f32 %v1468_v39, %v1391_v61  ;;  %v1537_v45 = vpop.permute.xlu1 %160 }
  0xb5   :  { %v1506_v13 = vpop.eup %1058  ;;  %1078 = vtanh.f32 %v951_v17  ;;  %v739_v27 = vadd.f32 %v735_v19, %v1456_v2  ;;  %v844_v40 = vadd.f32 %v840_v62, %v1456_v2  ;;  %v320_v43 = vadd.f32 %v1394_v23, %v1468_v39  ;;  %v2285_v23 = vld [vmem:[#allocation23_spill] sm:$0xff]  ;;  %v1553_v33 = vpop.permute.xlu0 %201 }
  0xb6   :  { %v1514_v35 = vpop.eup %1060  ;;  %1080 = vtanh.f32 %v141_v34  ;;  %v949_v28 = vadd.f32 %v945_v7, %v1456_v2  ;;  %v425_v61 = vadd.f32 %v1397_v46, %v1468_v39  ;;  %v1520_v36 = vmul.f32 %v1049_v57, %v1493_v9  ;;  %v2287_v2 = vld [vmem:[#allocation31_spill] sm:$0xff] }
  0xb7   :  { %v1522_v37 = vpop.eup %1062  ;;  %1082 = vtanh.f32 %v319_v31  ;;  %v631_v63 = vadd.f32 %v2284_v53, %v2283_v38  ;;  %v736_v49 = vadd.f32 %v2286_v55, %v2285_v23  ;;  %v1529_v30 = vmul.f32 %v1051_v3, %v1493_v9 }
  0xb8   :  { %2282 = vst [vmem:[#allocation15_spill] sm:$0xff] %v1522_v37  ;;  %v1065_v4 = vpop.eup %1064  ;;  %1084 = vtanh.f32 %v424_v0  ;;  %v530_v46 = vadd.f32 %v2287_v2, %v1468_v39  ;;  %v841_v59 = vadd.f32 %v2289_v10, %v2288_v51  ;;  %v946_v50 = vadd.f32 %v2291_v11, %v2290_v15  ;;  %v1584_v62 = vpop.permute.xlu1 %191 }
  0xb9   :  { %v1067_v52 = vpop.eup %1066  ;;  %1086 = vtanh.f32 %v529_v29  ;;  %v635_v32 = vadd.f32 %v631_v63, %v1468_v39  ;;  %v1541_v54 = vadd.f32 %v736_v49, %v1468_v39  ;;  %v1544_v56 = vmul.f32 %v1065_v4, %v1480_v41  ;;  %v1614_v55 = vpop.permute.xlu0 %206 }
  0xba   :  { %v1069_v6 = vpop.eup %1068  ;;  %1088 = vtanh.f32 %v634_v25  ;;  %v1547_v14 = vadd.f32 %v841_v59, %v1468_v39  ;;  %v1550_v58 = vmul.f32 %v1067_v52, %v1480_v41  ;;  %v181_v42 = vmul.f32 %v1049_v57, %v1520_v36 }
  0xbb   :  { %v1071_v16 = vpop.eup %1070  ;;  %1090 = vtanh.f32 %v739_v27  ;;  %v184_v5 = vmul.f32 %v1065_v4, %v1544_v56  ;;  %v1557_v17 = vmul.f32 %v1069_v6, %v1480_v41  ;;  %v340_v34 = vmul.f32 %v1051_v3, %v1529_v30 }
  0xbc   :  { %v1073_v48 = vpop.eup %1072  ;;  %1092 = vtanh.f32 %v844_v40  ;;  %v343_v8 = vmul.f32 %v1067_v52, %v1550_v58  ;;  %v1562_v31 = vmul.f32 %v1071_v16, %v1480_v41  ;;  %v1566_v57 = vmul.f32 %v1488_v60, %v1493_v9 }
  0xbd   :  { %v1075_v0 = vpop.eup %1074  ;;  %1094 = vtanh.f32 %v949_v28  ;;  %v1569_v47 = vadd.f32 %v946_v50, %v1468_v39  ;;  %v448_v44 = vmul.f32 %v1069_v6, %v1557_v17  ;;  %v1573_v3 = vmul.f32 %v1073_v48, %v1480_v41 }
  0xbe   :  { %v1575_v29 = vpop.eup %1076  ;;  %1096 = vtanh.f32 %v142_v12  ;;  %v1578_v18 = vsub.f32 %v1480_v41, %v184_v5  ;;  %v553_v19 = vmul.f32 %v1071_v16, %v1562_v31  ;;  %v1582_v20 = vmul.f32 %v1075_v0, %v1480_v41 }
  0xbf   :  { %v1586_v39 = vpop.eup %1078  ;;  %v1589_v25 = vsub.f32 %v1480_v41, %v343_v8  ;;  %v1592_v26 = vsub.f32 %v1493_v9, %v181_v42  ;;  %v1596_v7 = vmul.f32 %v1495_v1, %v1493_v9  ;;  %v1600_v12 = vmul.f32 %v1500_v24, %v1493_v9 }
  0xc0   :  { %2292 = vst [vmem:[#allocation16_spill] sm:$0xff] %v1578_v18  ;;  %v1081_v27 = vpop.eup %1080  ;;  %v1603_v40 = vsub.f32 %v1480_v41, %v448_v44  ;;  %v658_v28 = vmul.f32 %v1073_v48, %v1573_v3  ;;  %v1607_v38 = vsub.f32 %v1493_v9, %v340_v34  ;;  %v1611_v53 = vmul.f32 %v1488_v60, %v1566_v57 }
  0xc1   :  { %2293 = vst [vmem:[#allocation2_spill] sm:$0xff] %v1589_v25  ;;  %2294 = vst [vmem:[#allocation3_spill] sm:$0xff] %v1592_v26  ;;  %v1083_v63 = vpop.eup %1082  ;;  %1098 = vtanh.f32 %v320_v43  ;;  %v169_v23 = vmul.f32 %v1081_v27, %v1463_v22  ;;  %v1617_v49 = vsub.f32 %v1480_v41, %v553_v19  ;;  %v1621_v4 = vmul.f32 %v1584_v62, %v1592_v26 }
  0xc2   :  { %2295 = vst [vmem:[#allocation4_spill] sm:$0xff] %v1603_v40  ;;  %2296 = vst [vmem:[#allocation5_spill] sm:$0xff] %v1607_v38  ;;  %v1085_v2 = vpop.eup %1084  ;;  %1100 = vtanh.f32 %v425_v61  ;;  %v327_v51 = vmul.f32 %v1083_v63, %v1463_v22  ;;  %v1626_v60 = vmul.f32 %v1614_v55, %v1578_v18  ;;  %v763_v43 = vmul.f32 %v1075_v0, %v1582_v20 }
  0xc3   :  { %2297 = vst [vmem:[#allocation6_spill] sm:$0xff] %v1617_v49  ;;  %v1087_v10 = vpop.eup %1086  ;;  %1102 = vtanh.f32 %v530_v46  ;;  %v182_v59 = vmul.f32 %v1081_v27, %v169_v23  ;;  %v432_v15 = vmul.f32 %v1085_v2, %v1463_v22  ;;  %v1632_v11 = vmul.f32 %v1589_v25, %v1614_v55 }
  0xc4   :  { %v1089_v50 = vpop.eup %1088  ;;  %v341_v52 = vmul.f32 %v1083_v63, %v327_v51  ;;  %v1635_v61 = vmul.f32 %v1087_v10, %v1463_v22  ;;  %v1639_v6 = vmul.f32 %v1603_v40, %v1614_v55  ;;  %v1642_v42 = vsub.f32 %v1480_v41, %v658_v28 }
  0xc5   :  { %v1091_v46 = vpop.eup %1090  ;;  %1104 = vtanh.f32 %v635_v32  ;;  %v446_v16 = vmul.f32 %v1085_v2, %v432_v15  ;;  %v1645_v5 = vmul.f32 %v1089_v50, %v1463_v22  ;;  %v1649_v34 = vmul.f32 %v1617_v49, %v1614_v55 }
  0xc6   :  { %2298 = vst [vmem:[#allocation26_spill] sm:$0xff] %v1642_v42  ;;  %v1093_v48 = vpop.eup %1092  ;;  %v551_v8 = vmul.f32 %v1087_v10, %v1635_v61  ;;  %v1653_v0 = vmul.f32 %v1091_v46, %v1463_v22  ;;  %v1656_v44 = vsub.f32 %v1480_v41, %v763_v43  ;;  %v1660_v32 = vmul.f32 %v1575_v29, %v1480_v41 }
  0xc7   :  { %v1095_v19 = vpop.eup %1094  ;;  %v1663_v27 = vsub.f32 %v1463_v22, %v182_v59  ;;  %v1666_v28 = vsub.f32 %v1463_v22, %v341_v52  ;;  %v656_v63 = vmul.f32 %v1089_v50, %v1645_v5  ;;  %v1670_v2 = vmul.f32 %v1093_v48, %v1463_v22 }
  0xc8   :  { %2299 = vst [vmem:[#allocation27_spill] sm:$0xff] %v1656_v44  ;;  %2300 = vst [vmem:[#allocation28_spill] sm:$0xff] %v1660_v32  ;;  %v1097_v10 = vpop.eup %1096  ;;  %v1673_v43 = vsub.f32 %v1463_v22, %v446_v16  ;;  %v1676_v26 = vsub.f32 %v1463_v22, %v551_v8  ;;  %v761_v49 = vmul.f32 %v1091_v46, %v1653_v0  ;;  %1106 = vtanh.f32 %v1541_v54 }
  0xc9   :  { %2301 = vst [vmem:[#allocation29_spill] sm:$0xff] %v1663_v27  ;;  %2302 = vst [vmem:[#allocation30_spill] sm:$0xff] %v1666_v28  ;;  %v1680_v59 = vmul.f32 %v1095_v19, %v1463_v22  ;;  %v1684_v52 = vsub.f32 %v1463_v22, %v656_v63  ;;  %v866_v50 = vmul.f32 %v1093_v48, %v1670_v2  ;;  %1108 = vtanh.f32 %v1547_v14 }
  0xca   :  { %2303 = vst [vmem:[#allocation7_spill] sm:$0xff] %v1673_v43  ;;  %2304 = vst [vmem:[#allocation8_spill] sm:$0xff] %v1676_v26  ;;  %v1689_v40 = vmul.f32 %v1642_v42, %v1614_v55  ;;  %v1693_v16 = vsub.f32 %v1463_v22, %v761_v49  ;;  %v1697_v46 = vmul.f32 %v1656_v44, %v1614_v55  ;;  %1110 = vtanh.f32 %v1569_v47 }
  0xcb   :  { %2305 = vst [vmem:[#allocation9_spill] sm:$0xff] %v1680_v59  ;;  %2306 = vst [vmem:[#allocation10_spill] sm:$0xff] %v1684_v52  ;;  %v868_v54 = vmul.f32 %v1575_v29, %v1660_v32  ;;  %v1099_v8 = vpop.eup %1098  ;;  %v210_v48 = vmul.f32 %v1512_v21, %v1663_v27  ;;  %v349_v63 = vmul.f32 %v1666_v28, %v1512_v21 }
  0xcc   :  { %2307 = vst [vmem:[#allocation11_spill] sm:$0xff] %v1689_v40  ;;  %2308 = vst [vmem:[#allocation12_spill] sm:$0xff] %v1693_v16  ;;  %v170_v14 = vmul.f32 %v1097_v10, %v1537_v45  ;;  %v1101_v49 = vpop.eup %1100  ;;  %v454_v42 = vmul.f32 %v1673_v43, %v1512_v21  ;;  %v1711_v44 = vmul.f32 %v1676_v26, %v1512_v21 }
  0xcd   :  { %2309 = vst [vmem:[#allocation13_spill] sm:$0xff] %v1697_v46  ;;  %v1714_v29 = vmul.f32 %v1095_v19, %v1680_v59  ;;  %v172_v47 = vadd.f32 %v169_v23, %v1520_v36  ;;  %v1103_v25 = vpop.eup %1102  ;;  %v1719_v27 = vmul.f32 %v1684_v52, %v1512_v21  ;;  %v1722_v28 = vsub.f32 %v1463_v22, %v866_v50 }
  0xce   :  { %v1726_v43 = vmul.f32 %v1586_v39, %v1480_v41  ;;  %v183_v18 = vmul.f32 %v1097_v10, %v170_v14  ;;  %v1730_v26 = vmul.f32 %v1693_v16, %v1512_v21  ;;  %v1733_v19 = vsub.f32 %v1480_v41, %v868_v54 }
  0xcf   :  { %2310 = vst [vmem:[#allocation14_spill] sm:$0xff] %v1722_v28  ;;  %v173_v36 = vadd.f32 %v172_v47, %v170_v14  ;;  %v328_v23 = vmul.f32 %v1099_v8, %v1537_v45  ;;  %v1736_v52 = vpop.eup %1104  ;;  %v330_v59 = vadd.f32 %v327_v51, %v1529_v30  ;;  %v348_v10 = vmul.f32 %v1607_v38, %v1584_v62 }
  0xd0   :  { %2311 = vst [vmem:[#allocation22_spill] sm:$0xff] %v1730_v26  ;;  %2312 = vst [vmem:[#allocation17_spill] sm:$0xff] %v1733_v19  ;;  %v1739_v50 = vsub.f32 %v1537_v45, %v183_v18  ;;  %v433_v37 = vmul.f32 %v1101_v49, %v1537_v45  ;;  %v213_v54 = vadd.f32 %v210_v48, %v1621_v4 }
  0xd1   :  { %v174_v16 = vadd.f32 %v173_v36, %v1544_v56  ;;  %v342_v46 = vmul.f32 %v1099_v8, %v328_v23  ;;  %v435_v14 = vadd.f32 %v432_v15, %v1566_v57  ;;  %v331_v32 = vadd.f32 %v330_v59, %v328_v23 }
  0xd2   :  { %2313 = vst [vmem:[#allocation23_spill] sm:$0xff] %v1739_v50  ;;  %v211_v47 = vmul.f32 %v1553_v33, %v1739_v50  ;;  %v352_v18 = vadd.f32 %v349_v63, %v348_v10  ;;  %v447_v26 = vmul.f32 %v1101_v49, %v433_v37  ;;  %v1755_v38 = vsub.f32 %v1493_v9, %v1611_v53  ;;  %v1757_v56 = vpop.eup %1106 }
  0xd3   :  { %v175_v40 = vrot.slane %v174_v16, 4  ;;  %v1751_v30 = vsub.f32 %v1537_v45, %v342_v46  ;;  %v436_v51 = vadd.f32 %v435_v14, %v433_v37  ;;  %v332_v57 = vadd.f32 %v331_v32, %v1550_v58  ;;  %v1764_v8 = vpop.eup %1108 }
  0xd4   :  { %2315 = vst [vmem:[#allocation31_spill] sm:$0xff] %v1755_v38  ;;  %v214_v4 = vadd.f32 %v213_v54, %v211_v47  ;;  %v1761_v15 = vsub.f32 %v1537_v45, %v447_v26  ;;  %v538_v59 = vmul.f32 %v1103_v25, %v1537_v45  ;;  %v453_v53 = vmul.f32 %v1755_v38, %v1584_v62  ;;  %v1771_v63 = vpop.eup %1110 }
  0xd5   :  { %2314 = vst [vmem:[#allocation18_spill] sm:$0xff] %v1751_v30  ;;  %v176_v48 = vadd.f32 %v175_v40, %v174_v16  ;;  %v350_v37 = vmul.f32 %v1751_v30, %v1553_v33  ;;  %v437_v46 = vadd.f32 %v436_v51, %v1557_v17  ;;  %v333_v32 = vrot.slane %v332_v57, 4 }
  0xd6   :  { %2316 = vst [vmem:[#allocation24_spill] sm:$0xff] %v1761_v15  ;;  %v215_v58 = vadd.f32 %v214_v4, %v1626_v60  ;;  %v455_v26 = vmul.f32 %v1761_v15, %v1553_v33  ;;  %v540_v49 = vadd.f32 %v1635_v61, %v1596_v7  ;;  %v457_v23 = vadd.f32 %v454_v42, %v453_v53 }
  0xd7   :  { %v177_v40 = vrot.slane %v176_v48, 2  ;;  %v353_v16 = vadd.f32 %v352_v18, %v350_v37  ;;  %v438_v36 = vrot.slane %v437_v46, 4  ;;  %v334_v17 = vadd.f32 %v333_v32, %v332_v57 }
  0xd8   :  { %v216_v10 = vrot.slane %v215_v58, 4  ;;  %v541_v54 = vadd.f32 %v540_v49, %v538_v59  ;;  %v550_v14 = vmul.f32 %v1495_v1, %v1596_v7  ;;  %v458_v4 = vadd.f32 %v457_v23, %v455_v26 }
  0xd9   :  { %v178_v47 = vadd.f32 %v177_v40, %v176_v48  ;;  %v354_v60 = vadd.f32 %v353_v16, %v1632_v11  ;;  %v439_v51 = vadd.f32 %v438_v36, %v437_v46  ;;  %v335_v15 = vrot.slane %v334_v17, 2 }
  0xda   :  { %v217_v30 = vadd.f32 %v216_v10, %v215_v58  ;;  %v542_v50 = vadd.f32 %v541_v54, %v1562_v31  ;;  %v552_v61 = vmul.f32 %v1103_v25, %v538_v59  ;;  %v459_v42 = vadd.f32 %v458_v4, %v1639_v6 }
  0xdb   :  { %v179_v38 = vrot.slane %v178_v47, 1  ;;  %v355_v18 = vrot.slane %v354_v60, 4  ;;  %v440_v37 = vrot.slane %v439_v51, 2  ;;  %v1785_v57 = vsub.f32 %v1463_v22, %v1714_v29 }
  0xdc   :  { %v218_v1 = vrot.slane %v217_v30, 2  ;;  %v336_v7 = vadd.f32 %v335_v15, %v334_v17  ;;  %v543_v48 = vrot.slane %v542_v50, 4  ;;  %v460_v53 = vrot.slane %v459_v42, 4 }
  0xdd   :  { %v356_v11 = vadd.f32 %v355_v18, %v354_v60  ;;  %v441_v46 = vadd.f32 %v440_v37, %v439_v51  ;;  %v1788_v58 = vsub.f32 %v1493_v9, %v550_v14  ;;  %v973_v31 = vmul.f32 %v1586_v39, %v1726_v43 }
  0xde   :  { %v337_v25 = vrot.slane %v336_v7, 1  ;;  %v544_v59 = vadd.f32 %v543_v48, %v542_v50  ;;  %v1793_v6 = vsub.f32 %v1537_v45, %v552_v61  ;;  %v180_v32 = vadd.f32 %v179_v38, %v178_v47 }
  0xdf   :  { %v357_v22 = vrot.slane %v356_v11, 2  ;;  %v461_v29 = vadd.f32 %v460_v53, %v459_v42  ;;  %v558_v15 = vmul.f32 %v1788_v58, %v1584_v62  ;;  %v1797_v26 = vadd.f32 %v218_v1, %v217_v30 }
  0xe0   :  { %v338_v49 = vadd.f32 %v337_v25, %v336_v7  ;;  %v545_v40 = vrot.slane %v544_v59, 2  ;;  %v560_v16 = vmul.f32 %v1793_v6, %v1553_v33  ;;  %v1803_v39 = vmul.f32 %v1722_v28, %v1512_v21 }
  0xe1   :  { %v442_v50 = vrot.slane %v441_v46, 1  ;;  %v462_v36 = vrot.slane %v461_v29, 2  ;;  %v562_v38 = vadd.f32 %v1711_v44, %v558_v15  ;;  %v1808_v23 = vmul.f32 %v1785_v57, %v1512_v21 }
  0xe2   :  { %v1812_v30 = vmul.f32 %v1733_v19, %v1614_v55  ;;  %v1814_v10 = vadd.f32 %v357_v22, %v356_v11  ;;  %v643_v17 = vmul.f32 %v1736_v52, %v1537_v45  ;;  %v1819_v54 = vsub.f32 %v1480_v41, %v973_v31 }
  0xe3   :  { %v339_v14 = vadd.f32 %v338_v49, %v180_v32  ;;  %v563_v47 = vadd.f32 %v562_v38, %v560_v16  ;;  %v645_v44 = vadd.f32 %v1645_v5, %v1600_v12  ;;  %v220_v21 = vrot.slane %v1797_v26, 1 }
  0xe4   :  { %2317 = vst [vmem:[#allocation19_spill] sm:$0xff] %v1819_v54  ;;  %v546_v60 = vadd.f32 %v545_v40, %v544_v59  ;;  %v655_v51 = vmul.f32 %v1500_v24, %v1600_v12  ;;  %v657_v4 = vmul.f32 %v1736_v52, %v643_v17  ;;  %v443_v61 = vadd.f32 %v442_v50, %v441_v46 }
  0xe5   :  { %v1827_v18 = vadd.f32 %v462_v36, %v461_v29  ;;  %v564_v37 = vadd.f32 %v563_v47, %v1649_v34  ;;  %v646_v41 = vadd.f32 %v645_v44, %v643_v17  ;;  %v359_v42 = vrot.slane %v1814_v10, 1  ;;  %v2318_v47 = vld [vmem:[#allocation11_spill] sm:$0xff] }
  0xe6   :  { %v1832_v1 = vsub.f32 %v1493_v9, %v655_v51  ;;  %v1835_v5 = vsub.f32 %v1537_v45, %v657_v4  ;;  %v746_v7 = vmul.f32 %v1506_v13, %v1493_v9  ;;  %v444_v24 = vadd.f32 %v443_v61, %v339_v14 }
  0xe7   :  { %v565_v12 = vrot.slane %v564_v37, 4  ;;  %v647_v52 = vadd.f32 %v646_v41, %v1573_v3  ;;  %v748_v48 = vmul.f32 %v1757_v56, %v1537_v45  ;;  %v547_v34 = vrot.slane %v546_v60, 1  ;;  %v2319_v41 = vld [vmem:[#allocation22_spill] sm:$0xff] }
  0xe8   :  { %v663_v11 = vmul.f32 %v1832_v1, %v1584_v62  ;;  %v665_v46 = vmul.f32 %v1835_v5, %v1553_v33  ;;  %v750_v53 = vadd.f32 %v1653_v0, %v746_v7  ;;  %v464_v31 = vrot.slane %v1827_v18, 1 }
  0xe9   :  { %v648_v25 = vrot.slane %v647_v52, 4  ;;  %v760_v59 = vmul.f32 %v1506_v13, %v746_v7  ;;  %v762_v32 = vmul.f32 %v1757_v56, %v748_v48  ;;  %v851_v29 = vmul.f32 %v1514_v35, %v1493_v9 }
  0xea   :  { %v667_v3 = vadd.f32 %v1719_v27, %v663_v11  ;;  %v751_v22 = vadd.f32 %v750_v53, %v748_v48  ;;  %v853_v15 = vmul.f32 %v1764_v8, %v1537_v45  ;;  %v566_v49 = vadd.f32 %v565_v12, %v564_v37  ;;  %v2320_v12 = vld [vmem:[#allocation28_spill] sm:$0xff] }
  0xeb   :  { %v649_v40 = vadd.f32 %v648_v25, %v647_v52  ;;  %v1856_v0 = vsub.f32 %v1493_v9, %v760_v59  ;;  %v1859_v16 = vsub.f32 %v1537_v45, %v762_v32  ;;  %v855_v27 = vadd.f32 %v1670_v2, %v851_v29 }
  0xec   :  { %v668_v13 = vadd.f32 %v667_v3, %v665_v46  ;;  %v752_v56 = vadd.f32 %v751_v22, %v1582_v20  ;;  %v865_v50 = vmul.f32 %v1514_v35, %v851_v29  ;;  %v548_v36 = vadd.f32 %v547_v34, %v546_v60  ;;  %v1882_v3 = vpop.permute.xlu1 %223  ;;  %v2321_v29 = vld [vmem:[#allocation13_spill] sm:$0xff] }
  0xed   :  { %v650_v38 = vrot.slane %v649_v40, 2  ;;  %v768_v17 = vmul.f32 %v1856_v0, %v1584_v62  ;;  %v770_v14 = vmul.f32 %v1859_v16, %v1553_v33  ;;  %v856_v4 = vadd.f32 %v855_v27, %v853_v15 }
  0xee   :  { %v669_v44 = vadd.f32 %v668_v13, %v2318_v47  ;;  %v753_v51 = vrot.slane %v752_v56, 4  ;;  %v867_v61 = vmul.f32 %v1764_v8, %v853_v15  ;;  %v567_v37 = vrot.slane %v566_v49, 2  ;;  %v2323_v47 = vld [vmem:[#allocation9_spill] sm:$0xff] }
  0xef   :  { %v651_v20 = vadd.f32 %v650_v38, %v649_v40  ;;  %v772_v2 = vadd.f32 %v2319_v41, %v768_v17  ;;  %v1872_v35 = vsub.f32 %v1493_v9, %v865_v50  ;;  %v857_v52 = vadd.f32 %v856_v4, %v2320_v12 }
  0xf0   :  { %v670_v60 = vrot.slane %v669_v44, 4  ;;  %v754_v7 = vadd.f32 %v753_v51, %v752_v56  ;;  %v1876_v48 = vsub.f32 %v1537_v45, %v867_v61  ;;  %v549_v34 = vadd.f32 %v548_v36, %v444_v24  ;;  %v2322_v24 = vld [vmem:[#allocation15_spill] sm:$0xff] }
  0xf1   :  { %v652_v11 = vrot.slane %v651_v20, 1  ;;  %v773_v46 = vadd.f32 %v772_v2, %v770_v14  ;;  %v873_v8 = vmul.f32 %v1872_v35, %v1584_v62  ;;  %v858_v59 = vrot.slane %v857_v52, 4 }
  0xf2   :  { %v671_v53 = vadd.f32 %v670_v60, %v669_v44  ;;  %v755_v25 = vrot.slane %v754_v7, 2  ;;  %v875_v32 = vmul.f32 %v1876_v48, %v1553_v33  ;;  %v568_v22 = vadd.f32 %v567_v37, %v566_v49 }
  0xf3   :  { %v774_v15 = vadd.f32 %v773_v46, %v2321_v29  ;;  %v877_v40 = vadd.f32 %v1803_v39, %v873_v8  ;;  %v956_v13 = vmul.f32 %v2322_v24, %v1493_v9  ;;  %v859_v50 = vadd.f32 %v858_v59, %v857_v52  ;;  %v1897_v52 = vpop.permute.xlu1 %252 }
  0xf4   :  { %v672_v56 = vrot.slane %v671_v53, 2  ;;  %v756_v27 = vadd.f32 %v755_v25, %v754_v7  ;;  %v958_v36 = vmul.f32 %v1771_v63, %v1537_v45  ;;  %v653_v38 = vadd.f32 %v652_v11, %v651_v20 }
  0xf5   :  { %v775_v17 = vrot.slane %v774_v15, 4  ;;  %v878_v14 = vadd.f32 %v877_v40, %v875_v32  ;;  %v960_v44 = vadd.f32 %v2323_v47, %v956_v13  ;;  %v860_v4 = vrot.slane %v859_v50, 2 }
  0xf6   :  { %v673_v51 = vadd.f32 %v672_v56, %v671_v53  ;;  %v757_v49 = vrot.slane %v756_v27, 1  ;;  %v970_v61 = vmul.f32 %v2322_v24, %v956_v13  ;;  %v972_v2 = vmul.f32 %v1771_v63, %v958_v36 }
  0xf7   :  { %v776_v39 = vadd.f32 %v775_v17, %v774_v15  ;;  %v879_v37 = vadd.f32 %v878_v14, %v1812_v30  ;;  %v961_v41 = vadd.f32 %v960_v44, %v958_v36  ;;  %v569_v60 = vrot.slane %v568_v22, 1  ;;  %v2330_v14 = vld [vmem:[#allocation16_spill] sm:$0xff] }
  0xf8   :  { %v654_v7 = vadd.f32 %v653_v38, %v549_v34  ;;  %v861_v12 = vadd.f32 %v860_v4, %v859_v50  ;;  %v1895_v20 = vsub.f32 %v1493_v9, %v970_v61  ;;  %v1901_v53 = vsub.f32 %v1537_v45, %v972_v2  ;;  %v2332_v44 = vld [vmem:[#allocation4_spill] sm:$0xff] }
  0xf9   :  { %v777_v11 = vrot.slane %v776_v39, 2  ;;  %v880_v46 = vrot.slane %v879_v37, 4  ;;  %v962_v8 = vadd.f32 %v961_v41, %v1726_v43  ;;  %v674_v25 = vrot.slane %v673_v51, 1  ;;  %v2336_v41 = vld [vmem:[#allocation27_spill] sm:$0xff] }
  0xfa   :  { %v758_v30 = vadd.f32 %v757_v49, %v756_v27  ;;  %v862_v59 = vrot.slane %v861_v12, 1  ;;  %v978_v63 = vmul.f32 %v1895_v20, %v1584_v62  ;;  %v980_v9 = vmul.f32 %v1901_v53, %v1553_v33  ;;  %v265_v62 = vpop.permute.xlu0 %264  ;;  %v257_v27 = vpop.permute.xlu1 %256 }
  0xfb   :  { %v778_v34 = vadd.f32 %v777_v11, %v776_v39  ;;  %v881_v32 = vadd.f32 %v880_v46, %v879_v37  ;;  %v963_v29 = vrot.slane %v962_v8, 4  ;;  %v981_v15 = vmul.f32 %v1819_v54, %v1614_v55  ;;  %v2335_v39 = vld [vmem:[#allocation26_spill] sm:$0xff]  ;;  %v2337_v11 = vld [vmem:[#allocation3_spill] sm:$0xff] }
  0xfc   :  { %v982_v43 = vadd.f32 %v1808_v23, %v978_v63  ;;  %v1913_v45 = vadd.f32 %v220_v21, %v1797_v26  ;;  %v759_v40 = vadd.f32 %v758_v30, %v654_v7  ;;  %v1918_v56 = vadd.f32 %v359_v42, %v1814_v10  ;;  %v2331_v42 = vld [vmem:[#allocation2_spill] sm:$0xff]  ;;  %v2338_v30 = vld [vmem:[#allocation5_spill] sm:$0xff]  ;;  %v2339_v63 = vld [vmem:[#allocation31_spill] sm:$0xff] }
  0xfd   :  { %v882_v24 = vrot.slane %v881_v32, 2  ;;  %v964_v13 = vadd.f32 %v963_v29, %v962_v8  ;;  %v1923_v33 = vadd.f32 %v464_v31, %v1827_v18  ;;  %v779_v55 = vrot.slane %v778_v34, 1  ;;  %v2347_v8 = vld [vmem:[#allocation8_spill] sm:$0xff] }
  0xfe   :  { %2324 = vst [vmem:[#allocation25_spill] sm:$0xff] %v1913_v45  ;;  %2325 = vst [vmem:[#allocation20_spill] sm:$0xff] %v1918_v56  ;;  %v983_v23 = vadd.f32 %v982_v43, %v980_v9  ;;  %v1925_v50 = vadd.f32 %v569_v60, %v568_v22  ;;  %v1927_v26 = vadd.f32 %v674_v25, %v673_v51  ;;  %v2333_v22 = vld [vmem:[#allocation6_spill] sm:$0xff] }
  0xff   :  { %2326 = vst [vmem:[#allocation11_spill] sm:$0xff] %v1923_v33  ;;  %v863_v21 = vadd.f32 %v862_v59, %v861_v12  ;;  %v965_v36 = vrot.slane %v964_v13, 2  ;;  %v1929_v38 = vadd.f32 %v882_v24, %v881_v32  ;;  %v1932_v10 = vmul.f32 %v265_v62, %v2330_v14  ;;  %v1970_v32 = vpop.permute.xlu1 %231 }
 0x100   :  { %2327 = vst [vmem:[#allocation22_spill] sm:$0xff] %v1925_v50  ;;  %2328 = vst [vmem:[#allocation28_spill] sm:$0xff] %v1927_v26  ;;  %v984_v17 = vadd.f32 %v983_v23, %v981_v15  ;;  %v1935_v47 = vmul.f32 %v2331_v42, %v265_v62  ;;  %v1938_v49 = vmul.f32 %v2332_v44, %v265_v62  ;;  %v2344_v23 = vld [vmem:[#allocation29_spill] sm:$0xff]  ;;  %v2349_v50 = vld [vmem:[#allocation12_spill] sm:$0xff] }
 0x101   :  { %2329 = vst [vmem:[#allocation13_spill] sm:$0xff] %v1929_v38  ;;  %v864_v18 = vadd.f32 %v863_v21, %v759_v40  ;;  %v966_v31 = vadd.f32 %v965_v36, %v964_v13  ;;  %v1941_v4 = vmul.f32 %v2333_v22, %v265_v62  ;;  %v1943_v51 = vadd.f32 %v779_v55, %v778_v34  ;;  %v2345_v36 = vld [vmem:[#allocation30_spill] sm:$0xff] }
 0x102   :  { %v985_v61 = vrot.slane %v984_v17, 4  ;;  %v1946_v37 = vmul.f32 %v2335_v39, %v265_v62  ;;  %v1949_v2 = vmul.f32 %v2336_v41, %v265_v62  ;;  %v1952_v7 = vmul.f32 %v1733_v19, %v265_v62  ;;  %v2348_v38 = vld [vmem:[#allocation10_spill] sm:$0xff] }
 0x103   :  { %2334 = vst [vmem:[#allocation15_spill] sm:$0xff] %v1943_v51  ;;  %v967_v60 = vrot.slane %v966_v31, 1  ;;  %v1955_v12 = vmul.f32 %v1819_v54, %v265_v62  ;;  %v1959_v46 = vmul.f32 %v1882_v3, %v2337_v11  ;;  %v1964_v59 = vmul.f32 %v2338_v30, %v1882_v3 }
 0x104   :  { %v986_v25 = vadd.f32 %v985_v61, %v984_v17  ;;  %v1968_v34 = vmul.f32 %v2339_v63, %v1882_v3  ;;  %v1974_v9 = vmul.f32 %v1788_v58, %v1882_v3  ;;  %v1978_v15 = vmul.f32 %v1832_v1, %v1882_v3 }
 0x105   :  { %v968_v29 = vadd.f32 %v967_v60, %v966_v31  ;;  %v1982_v43 = vmul.f32 %v1856_v0, %v1882_v3  ;;  %v1986_v24 = vmul.f32 %v1872_v35, %v1882_v3  ;;  %v1990_v13 = vmul.f32 %v1895_v20, %v1882_v3  ;;  %v2346_v31 = vld [vmem:[#allocation7_spill] sm:$0xff] }
 0x106   :  { %2340 = vst [vmem:[#allocation9_spill] sm:$0xff] %v1978_v15  ;;  %v987_v40 = vrot.slane %v986_v25, 2  ;;  %v267_v62 = vmul.f32 %v1897_v52, %v2337_v11  ;;  %v268_v21 = vmul.f32 %v257_v27, %v2344_v23  ;;  %v375_v17 = vmul.f32 %v2345_v36, %v257_v27 }
 0x107   :  { %2341 = vst [vmem:[#allocation16_spill] sm:$0xff] %v1982_v43  ;;  %2342 = vst [vmem:[#allocation2_spill] sm:$0xff] %v1986_v24  ;;  %v969_v55 = vadd.f32 %v968_v29, %v864_v18  ;;  %v480_v61 = vmul.f32 %v2346_v31, %v257_v27  ;;  %v374_v60 = vmul.f32 %v2338_v30, %v1897_v52 }
 0x108   :  { %2343 = vst [vmem:[#allocation4_spill] sm:$0xff] %v1990_v13  ;;  %v585_v51 = vmul.f32 %v2347_v8, %v257_v27  ;;  %v690_v26 = vmul.f32 %v2348_v38, %v257_v27  ;;  %v795_v3 = vmul.f32 %v2349_v50, %v257_v27  ;;  %v479_v18 = vmul.f32 %v2339_v63, %v1897_v52  ;;  %v261_v63 = vpop.permute.xlu1 %260 }
 0x109   :  { %1020 = vst [vmem:[%s2180_s4] sm:$0x1] %v969_v55  ;;  %v584_v11 = vmul.f32 %v1788_v58, %v1897_v52  ;;  %v689_v29 = vmul.f32 %v1832_v1, %v1897_v52  ;;  %v900_v30 = vmul.f32 %v1722_v28, %v257_v27  ;;  %v794_v33 = vmul.f32 %v1856_v0, %v1897_v52  ;;  %v2350_v0 = vld [vmem:[#allocation23_spill] sm:$0xff] }
 0x10a   :  { %v899_v56 = vmul.f32 %v1872_v35, %v1897_v52  ;;  %v1004_v55 = vmul.f32 %v1895_v20, %v1897_v52  ;;  %v1005_v45 = vmul.f32 %v1785_v57, %v257_v27  ;;  %v2019_v13 = vadd.f32 %v987_v40, %v986_v25  ;;  %v2351_v35 = vld [vmem:[#allocation18_spill] sm:$0xff]  ;;  %v2352_v25 = vld [vmem:[#allocation24_spill] sm:$0xff] }
 0x10b   :  { %v271_v58 = vadd.f32 %v268_v21, %v267_v62  ;;  %v378_v54 = vadd.f32 %v375_v17, %v374_v60  ;;  %v483_v24 = vadd.f32 %v480_v61, %v479_v18  ;;  %v588_v1 = vadd.f32 %v585_v51, %v584_v11 }
 0x10c   :  { %v693_v19 = vadd.f32 %v690_v26, %v689_v29  ;;  %v798_v28 = vadd.f32 %v795_v3, %v794_v33  ;;  %v903_v43 = vadd.f32 %v900_v30, %v899_v56  ;;  %v1008_v41 = vadd.f32 %v1005_v45, %v1004_v55 }
 0x10d   :  { %v2023_v15 = vmul.f32 %v1970_v32, %v2350_v0  ;;  %v2027_v20 = vmul.f32 %v2351_v35, %v1970_v32  ;;  %v269_v52 = vmul.f32 %v261_v63, %v2350_v0  ;;  %v376_v27 = vmul.f32 %v2351_v35, %v261_v63 }
 0x10e   :  { %v481_v40 = vmul.f32 %v2352_v25, %v261_v63  ;;  %v586_v51 = vmul.f32 %v1793_v6, %v261_v63  ;;  %v691_v33 = vmul.f32 %v1835_v5, %v261_v63  ;;  %v796_v45 = vmul.f32 %v1859_v16, %v261_v63 }
 0x10f   :  { %v272_v56 = vadd.f32 %v271_v58, %v269_v52  ;;  %v901_v26 = vmul.f32 %v1876_v48, %v261_v63  ;;  %v1006_v62 = vmul.f32 %v1901_v53, %v261_v63  ;;  %v379_v21 = vadd.f32 %v378_v54, %v376_v27 }
 0x110   :  { %v484_v17 = vadd.f32 %v483_v24, %v481_v40  ;;  %v589_v61 = vadd.f32 %v588_v1, %v586_v51  ;;  %v694_v60 = vadd.f32 %v693_v19, %v691_v33  ;;  %v799_v18 = vadd.f32 %v798_v28, %v796_v45 }
 0x111   :  { %v273_v3 = vadd.f32 %v272_v56, %v1932_v10  ;;  %v904_v11 = vadd.f32 %v903_v43, %v901_v26  ;;  %v1009_v29 = vadd.f32 %v1008_v41, %v1006_v62  ;;  %v380_v30 = vadd.f32 %v379_v21, %v1935_v47 }
 0x112   :  { %v485_v55 = vadd.f32 %v484_v17, %v1938_v49  ;;  %v590_v58 = vadd.f32 %v589_v61, %v1941_v4  ;;  %v695_v0 = vadd.f32 %v694_v60, %v1946_v37  ;;  %v800_v63 = vadd.f32 %v799_v18, %v1949_v2 }
 0x113   :  { %v274_v35 = vrot.slane %v273_v3, 4  ;;  %v905_v54 = vadd.f32 %v904_v11, %v1952_v7  ;;  %v1010_v19 = vadd.f32 %v1009_v29, %v1955_v12  ;;  %v381_v24 = vrot.slane %v380_v30, 4 }
 0x114   :  { %v486_v10 = vrot.slane %v485_v55, 4  ;;  %v591_v28 = vrot.slane %v590_v58, 4  ;;  %v696_v43 = vrot.slane %v695_v0, 4  ;;  %v801_v1 = vrot.slane %v800_v63, 4 }
 0x115   :  { %v275_v41 = vadd.f32 %v274_v35, %v273_v3  ;;  %v906_v47 = vrot.slane %v905_v54, 4  ;;  %v1011_v52 = vrot.slane %v1010_v19, 4  ;;  %v382_v49 = vadd.f32 %v381_v24, %v380_v30 }
 0x116   :  { %v487_v27 = vadd.f32 %v486_v10, %v485_v55  ;;  %v592_v4 = vadd.f32 %v591_v28, %v590_v58  ;;  %v697_v40 = vadd.f32 %v696_v43, %v695_v0  ;;  %v802_v51 = vadd.f32 %v801_v1, %v800_v63  ;;  %v236_v10 = vpop.permute.xlu1 %235 }
 0x117   :  { %v276_v37 = vrot.slane %v275_v41, 2  ;;  %v907_v33 = vadd.f32 %v906_v47, %v905_v54  ;;  %v1012_v2 = vadd.f32 %v1011_v52, %v1010_v19  ;;  %v383_v56 = vrot.slane %v382_v49, 2  ;;  %v2353_v52 = vld [vmem:[#allocation21_spill] sm:$0xff] }
 0x118   :  { %v488_v7 = vrot.slane %v487_v27, 2  ;;  %v593_v45 = vrot.slane %v592_v4, 2  ;;  %v698_v12 = vrot.slane %v697_v40, 2  ;;  %v803_v62 = vrot.slane %v802_v51, 2 }
 0x119   :  { %v277_v26 = vadd.f32 %v276_v37, %v275_v41  ;;  %v908_v21 = vrot.slane %v907_v33, 2  ;;  %v1013_v17 = vrot.slane %v1012_v2, 2  ;;  %v384_v61 = vadd.f32 %v383_v56, %v382_v49  ;;  %v2355_v56 = vld [vmem:[#allocation27_spill] sm:$0xff] }
 0x11a   :  { %v489_v60 = vadd.f32 %v488_v7, %v487_v27  ;;  %v594_v3 = vadd.f32 %v593_v45, %v592_v4  ;;  %v699_v18 = vadd.f32 %v698_v12, %v697_v40  ;;  %v468_v11 = vmul.f32 %v2352_v25, %v1970_v32 }
 0x11b   :  { %v278_v29 = vrot.slane %v277_v26, 1  ;;  %v2047_v30 = vadd.f32 %v803_v62, %v802_v51  ;;  %v2049_v55 = vadd.f32 %v908_v21, %v907_v33  ;;  %v385_v58 = vrot.slane %v384_v61, 1  ;;  %v2358_v21 = vld [vmem:[#allocation17_spill] sm:$0xff] }
 0x11c   :  { %v490_v0 = vrot.slane %v489_v60, 1  ;;  %v595_v35 = vrot.slane %v594_v3, 1  ;;  %v700_v63 = vrot.slane %v699_v18, 1  ;;  %v573_v54 = vmul.f32 %v1793_v6, %v1970_v32 }
 0x11d   :  { %v678_v19 = vmul.f32 %v1835_v5, %v1970_v32  ;;  %v783_v24 = vmul.f32 %v1859_v16, %v1970_v32  ;;  %v888_v25 = vmul.f32 %v1876_v48, %v1970_v32  ;;  %v2061_v28 = vmul.f32 %v1901_v53, %v1970_v32 }
 0x11e   :  { %v2063_v43 = vadd.f32 %v278_v29, %v277_v26  ;;  %v805_v41 = vrot.slane %v2047_v30, 1  ;;  %v2066_v1 = vadd.f32 %v1013_v17, %v1012_v2  ;;  %v2068_v6 = vadd.f32 %v385_v58, %v384_v61  ;;  %v2354_v2 = vld [vmem:[#allocation9_spill] sm:$0xff] }
 0x11f   :  { %v2070_v5 = vadd.f32 %v490_v0, %v489_v60  ;;  %v2072_v47 = vadd.f32 %v595_v35, %v594_v3  ;;  %v910_v16 = vrot.slane %v2049_v55, 1  ;;  %v2075_v48 = vadd.f32 %v700_v63, %v699_v18 }
 0x120   :  { %v239_v53 = vmul.f32 %v2353_v52, %v2344_v23  ;;  %v241_v32 = vmul.f32 %v236_v10, %v2330_v14  ;;  %v362_v49 = vmul.f32 %v2345_v36, %v2353_v52  ;;  %v364_v27 = vmul.f32 %v2331_v42, %v236_v10 }
 0x121   :  { %v467_v4 = vmul.f32 %v2346_v31, %v2353_v52  ;;  %v469_v40 = vmul.f32 %v2332_v44, %v236_v10  ;;  %v572_v37 = vmul.f32 %v2347_v8, %v2353_v52  ;;  %v574_v23 = vmul.f32 %v2333_v22, %v236_v10 }
 0x122   :  { %v242_v51 = vadd.f32 %v239_v53, %v1959_v46  ;;  %v365_v33 = vadd.f32 %v362_v49, %v1964_v59  ;;  %v677_v14 = vmul.f32 %v2348_v38, %v2353_v52  ;;  %v679_v31 = vmul.f32 %v2335_v39, %v236_v10  ;;  %v2356_v38 = vld [vmem:[#allocation16_spill] sm:$0xff] }
 0x123   :  { %v470_v36 = vadd.f32 %v467_v4, %v1968_v34  ;;  %v575_v42 = vadd.f32 %v572_v37, %v1974_v9  ;;  %v782_v44 = vmul.f32 %v2349_v50, %v2353_v52  ;;  %v784_v22 = vmul.f32 %v2355_v56, %v236_v10  ;;  %v2357_v34 = vld [vmem:[#allocation14_spill] sm:$0xff] }
 0x124   :  { %v243_v8 = vadd.f32 %v242_v51, %v2023_v15  ;;  %v366_v46 = vadd.f32 %v365_v33, %v2027_v20  ;;  %v680_v59 = vadd.f32 %v677_v14, %v2354_v2  ;;  %v887_v9 = vmul.f32 %v2357_v34, %v2353_v52  ;;  %v2359_v20 = vld [vmem:[#allocation2_spill] sm:$0xff] }
 0x125   :  { %v471_v7 = vadd.f32 %v470_v36, %v468_v11  ;;  %v576_v45 = vadd.f32 %v575_v42, %v573_v54  ;;  %v785_v12 = vadd.f32 %v782_v44, %v2356_v38  ;;  %v889_v50 = vmul.f32 %v2358_v21, %v236_v10 }
 0x126   :  { %v244_v26 = vadd.f32 %v243_v8, %v241_v32  ;;  %v367_v39 = vadd.f32 %v366_v46, %v364_v27  ;;  %v681_v62 = vadd.f32 %v680_v59, %v678_v19  ;;  %v890_v60 = vadd.f32 %v887_v9, %v2359_v20  ;;  %v2360_v32 = vld [vmem:[#allocation19_spill] sm:$0xff] }
 0x127   :  { %v472_v17 = vadd.f32 %v471_v7, %v469_v40  ;;  %v577_v15 = vadd.f32 %v576_v45, %v574_v23  ;;  %v786_v61 = vadd.f32 %v785_v12, %v783_v24  ;;  %v992_v11 = vmul.f32 %v1785_v57, %v2353_v52  ;;  %v2361_v23 = vld [vmem:[#allocation4_spill] sm:$0xff] }
 0x128   :  { %v245_v3 = vrot.slane %v244_v26, 4  ;;  %v368_v18 = vrot.slane %v367_v39, 4  ;;  %v682_v29 = vadd.f32 %v681_v62, %v679_v31  ;;  %v891_v63 = vadd.f32 %v890_v60, %v888_v25  ;;  %v2363_v60 = vld [vmem:[#allocation20_spill] sm:$0xff] }
 0x129   :  { %v473_v58 = vrot.slane %v472_v17, 4  ;;  %v578_v0 = vrot.slane %v577_v15, 4  ;;  %v787_v35 = vadd.f32 %v786_v61, %v784_v22  ;;  %v994_v49 = vmul.f32 %v2360_v32, %v236_v10  ;;  %v2362_v61 = vld [vmem:[#allocation25_spill] sm:$0xff] }
 0x12a   :  { %v246_v54 = vadd.f32 %v245_v3, %v244_v26  ;;  %v369_v19 = vadd.f32 %v368_v18, %v367_v39  ;;  %v683_v53 = vrot.slane %v682_v29, 4  ;;  %v892_v40 = vadd.f32 %v891_v63, %v889_v50  ;;  %v2365_v63 = vld [vmem:[#allocation22_spill] sm:$0xff] }
 0x12b   :  { %v474_v24 = vadd.f32 %v473_v58, %v472_v17  ;;  %v579_v27 = vadd.f32 %v578_v0, %v577_v15  ;;  %v788_v4 = vrot.slane %v787_v35, 4  ;;  %v995_v57 = vadd.f32 %v992_v11, %v2361_v23  ;;  %v2364_v0 = vld [vmem:[#allocation11_spill] sm:$0xff] }
 0x12c   :  { %v247_v37 = vrot.slane %v246_v54, 2  ;;  %v370_v51 = vrot.slane %v369_v19, 2  ;;  %v684_v33 = vadd.f32 %v683_v53, %v682_v29  ;;  %v893_v42 = vrot.slane %v892_v40, 4 }
 0x12d   :  { %v475_v52 = vrot.slane %v474_v24, 2  ;;  %v580_v14 = vrot.slane %v579_v27, 2  ;;  %v789_v36 = vadd.f32 %v788_v4, %v787_v35  ;;  %v996_v8 = vadd.f32 %v995_v57, %v2061_v28 }
 0x12e   :  { %v248_v25 = vadd.f32 %v247_v37, %v246_v54  ;;  %v371_v31 = vadd.f32 %v370_v51, %v369_v19  ;;  %v685_v44 = vrot.slane %v684_v33, 2  ;;  %v894_v59 = vadd.f32 %v893_v42, %v892_v40  ;;  %v2366_v19 = vld [vmem:[#allocation28_spill] sm:$0xff] }
 0x12f   :  { %v476_v46 = vadd.f32 %v475_v52, %v474_v24  ;;  %v581_v10 = vadd.f32 %v580_v14, %v579_v27  ;;  %v790_v2 = vrot.slane %v789_v36, 2  ;;  %v997_v45 = vadd.f32 %v996_v8, %v994_v49  ;;  %v2367_v27 = vld [vmem:[#allocation13_spill] sm:$0xff] }
 0x130   :  { %v249_v56 = vrot.slane %v248_v25, 1  ;;  %v372_v22 = vrot.slane %v371_v31, 1  ;;  %v686_v7 = vadd.f32 %v685_v44, %v684_v33  ;;  %v895_v9 = vrot.slane %v894_v59, 2 }
 0x131   :  { %v477_v38 = vrot.slane %v476_v46, 1  ;;  %v582_v12 = vrot.slane %v581_v10, 1  ;;  %v791_v34 = vadd.f32 %v790_v2, %v789_v36  ;;  %v998_v21 = vrot.slane %v997_v45, 4 }
 0x132   :  { %v250_v26 = vadd.f32 %v249_v56, %v248_v25  ;;  %v373_v39 = vadd.f32 %v372_v22, %v371_v31  ;;  %v687_v62 = vrot.slane %v686_v7, 1  ;;  %v896_v28 = vadd.f32 %v895_v9, %v894_v59 }
 0x133   :  { %v478_v50 = vadd.f32 %v477_v38, %v476_v46  ;;  %v583_v17 = vadd.f32 %v582_v12, %v581_v10  ;;  %v792_v15 = vrot.slane %v791_v34, 1  ;;  %v999_v29 = vadd.f32 %v998_v21, %v997_v45 }
 0x134   :  { %v281_v20 = vsel %vm280_vm0, %v2362_v61, %v250_v26  ;;  %v387_v3 = vsel %vm280_vm0, %v2363_v60, %v373_v39  ;;  %v688_v18 = vadd.f32 %v687_v62, %v686_v7  ;;  %v806_v49 = vadd.f32 %v805_v41, %v2047_v30  ;;  %v2369_v30 = vld [vmem:[#allocation15_spill] sm:$0xff] }
 0x135   :  { %v283_v11 = vsel %vm282_vm1, %v281_v20, %v2063_v43  ;;  %v388_v58 = vsel %vm282_vm1, %v387_v3, %v2068_v6  ;;  %v492_v35 = vsel %vm280_vm0, %v2364_v0, %v478_v50  ;;  %v597_v54 = vsel %vm280_vm0, %v2365_v63, %v583_v17 }
 0x136   :  { %284 = vst [vmem:[%s2181_s5] sm:$0x7] %v283_v11  ;;  %389 = vst [vmem:[%s2181_s5 + $0x4] sm:$0x7] %v388_v58  ;;  %v493_v43 = vsel %vm282_vm1, %v492_v35, %v2070_v5  ;;  %v598_v6 = vsel %vm282_vm1, %v597_v54, %v2072_v47  ;;  %v702_v53 = vsel %vm280_vm0, %v2366_v19, %v688_v18  ;;  %v897_v47 = vrot.slane %v896_v28, 1 }
 0x137   :  { %v793_v32 = vadd.f32 %v792_v15, %v791_v34  ;;  %494 = vst [vmem:[%s2181_s5 + $0x8] sm:$0x7] %v493_v43  ;;  %599 = vst [vmem:[%s2181_s5 + $0xc] sm:$0x7] %v598_v6  ;;  %v703_v5 = vsel %vm282_vm1, %v702_v53, %v2075_v48  ;;  %v1000_v24 = vrot.slane %v999_v29, 2  ;;  %v2368_v4 = vrot.slane %v2367_v27, 1 }
 0x138   :  { %704 = vst [vmem:[%s2181_s5 + $0x10] sm:$0x7] %v703_v5  ;;  %v989_v37 = vrot.slane %v2019_v13, 1  ;;  %v898_v33 = vadd.f32 %v897_v47, %v896_v28  ;;  %v911_v48 = vadd.f32 %v910_v16, %v2049_v55  ;;  %v1015_v57 = vrot.slane %v2066_v1, 1 }
 0x139   :  { %v885_v40 = vadd.f32 %v2368_v4, %v2367_v27  ;;  %v807_v41 = vsel %vm280_vm0, %v2369_v30, %v793_v32  ;;  %v1001_v23 = vadd.f32 %v1000_v24, %v999_v29 }
 0x13a   :  { %v808_v51 = vsel %vm282_vm1, %v807_v41, %v806_v49  ;;  %v990_v42 = vadd.f32 %v989_v37, %v2019_v13  ;;  %v1016_v55 = vadd.f32 %v1015_v57, %v2066_v1 }
 0x13b   :  { %809 = vst [vmem:[%s2181_s5 + $0x14] sm:$0x7] %v808_v51  ;;  %v912_v52 = vsel %vm280_vm0, %v885_v40, %v898_v33  ;;  %v1002_v14 = vrot.slane %v1001_v23, 1 }
 0x13c   :  { %v913_v36 = vsel %vm282_vm1, %v912_v52, %v911_v48 }
 0x13d   :  { %914 = vst [vmem:[%s2181_s5 + $0x18] sm:$0x7] %v913_v36  ;;  %v1003_v25 = vadd.f32 %v1002_v14, %v1001_v23 }
 0x13f   :  { %v1017_v16 = vsel %vm280_vm0, %v990_v42, %v1003_v25 }
 0x140   :  { %v1018_v31 = vsel %vm282_vm1, %v1017_v16, %v1016_v55 }
 0x141   :  { %1019 = vst [vmem:[%s2181_s5 + $0x1c] sm:$0x7] %v1018_v31 }

</bundles_post_ra>
